<compile_context>
chip_gen: v7x
topology: tpu7x:2x2x1
jax: 0.10.0
libtpu: 0.0.40
codegen_flags: <defaults>
</compile_context>

<pallas_src>
import numpy as np
import jax
import jax.numpy as jnp
from jax.experimental import pallas as pl
from jax.experimental.pallas import tpu as pltpu

H = 128                 # LSTM hidden size (fixed by wheatGP_base)
C0, C1, C2 = 2, 4, 8    # conv output channel counts
K0, K1, K2 = 1, 3, 9    # conv kernel sizes
PAD = 1                 # every conv uses padding=1


# ------------------------------ fused kernel ------------------------------- #
def _fused_kernel(x1_ref, x2_ref, x3_ref, x4_ref, x5_ref,
                  w0_ref, b0_ref, w1_ref, b1_ref, w2_ref, b2_ref,
                  wiho_ref, biho_ref, wfc_ref, bfc_ref,
                  out_ref):
    f32 = jnp.float32

    # ---- layer 0: Conv1d(1,2,k=1,p=1)+ReLU on all 5 branches at once -------
    # w0_ref is (5, L, N0p): per-branch banded block, block-diagonal in its
    # output columns, so summing 5 tiny MXU dots yields a single lane-dense
    # activation row laid out [branch, channel, position].
    acc = b0_ref[...]
    x_refs = (x1_ref, x2_ref, x3_ref, x4_ref, x5_ref)
    for a in range(5):
        acc = acc + jnp.dot(x_refs[a][...], w0_ref[a], preferred_element_type=f32)
    y0 = jnp.maximum(acc, 0.0)

    # ---- layers 1 & 2: banded (Toeplitz) matmul + bias + ReLU ---------------
    y1 = jnp.maximum(
        jnp.dot(y0, w1_ref[...], preferred_element_type=f32) + b1_ref[...], 0.0)
    feat = jnp.maximum(
        jnp.dot(y1, w2_ref[...], preferred_element_type=f32) + b2_ref[...], 0.0)
    # feat columns are exactly PyTorch's cat order [branch, channel, position],
    # zero-padded from 5*C2*(L-4) up to a multiple of 128 lanes.

    # ---- single-step LSTM cell (h0 = c0 = 0 -> W_hh and f-gate drop out) ----
    gates = jnp.dot(feat, wiho_ref[...], preferred_element_type=f32) + biho_ref[...]
    i = jax.nn.sigmoid(gates[:, 0:H])
    g = jnp.tanh(gates[:, H:2 * H])
    o = jax.nn.sigmoid(gates[:, 2 * H:3 * H])
    h = o * jnp.tanh(i * g)                                   # (Bb, H)

    # ---- FC head: N=1 matmul replaced by VPU mul + cross-lane reduce --------
    out_ref[...] = jnp.sum(h * wfc_ref[...], axis=-1, keepdims=True) + bfc_ref[...]


# --------------------------------- wrapper --------------------------------- #
def wheatgp_forward(kp, x1, x2, x3, x4, x5):
    B, L = x1.shape
    Bb = B if B <= 256 else 256          # batch tile: bounds VMEM (v7x = 64 MiB)
    nb = pl.cdiv(B, Bb)

    xspec = pl.BlockSpec((Bb, L), lambda i: (i, 0))

    def full_spec(arr):
        # whole-array block with a constant index map: DMA'd once, never
        # re-streamed across grid steps.
        return pl.BlockSpec(arr.shape, lambda i: (0,) * arr.ndim)

    ws = (kp['w0s'], kp['b0r'], kp['w1p'], kp['b1r'], kp['w2p'], kp['b2r'],
          kp['wiho'], kp['biho'], kp['wfc'], kp['bfc'])

    return pl.pallas_call(
        _fused_kernel,
        out_shape=jax.ShapeDtypeStruct((B, 1), jnp.float32),
        grid=(nb,),
        in_specs=[xspec] * 5 + [full_spec(w) for w in ws],
        out_specs=pl.BlockSpec((Bb, 1), lambda i: (i, 0)),
        compiler_params=pltpu.CompilerParams(dimension_semantics=("parallel",)),
    )(x1, x2, x3, x4, x5, *ws)


# --------------------------------- params ---------------------------------- #
def init_params(key, lstm_dim):
    """Parameters in PyTorch layout."""
    ks = jax.random.split(key, 10)
    p = {}
    p['w0'] = 0.3 * jax.random.normal(ks[0], (C0, 1, K0), jnp.float32)
    p['b0'] = 0.1 * jax.random.normal(ks[1], (C0,), jnp.float32)
    p['w1'] = 0.3 * jax.random.normal(ks[2], (C1, C0, K1), jnp.float32)
    p['b1'] = 0.1 * jax.random.normal(ks[3], (C1,), jnp.float32)
    p['w2'] = 0.3 * jax.random.normal(ks[4], (C2, C1, K2), jnp.float32)
    p['b2'] = 0.1 * jax.random.normal(ks[5], (C2,), jnp.float32)
    p['w_ih'] = 0.05 * jax.random.normal(ks[6], (4 * H, lstm_dim), jnp.float32)
    p['b_ih'] = 0.05 * jax.random.normal(ks[7], (4 * H,), jnp.float32)
    p['b_hh'] = 0.05 * jax.random.normal(ks[8], (4 * H,), jnp.float32)
    # nn.LSTM's W_hh multiplies h0 == 0 (seq_len == 1), so it never reaches the kernel.
    p['w_fc'] = 0.1 * jax.random.normal(ks[9], (1, H), jnp.float32)
    p['b_fc'] = jnp.zeros((1,), jnp.float32)
    return p


def _ru(n, m=128):
    return ((n + m - 1) // m) * m


def _banded_conv(w, b, lin, pad, copies, k_pad, n_pad):
    """Fold a shared Conv1d into a banded matrix acting on flat rows.

    Input rows are laid out [branch, ci, position] (length k_pad, zero-padded);
    output columns are [branch, co, position] (length n_pad, zero-padded).
    Conv zero-padding is folded into the band (out-of-range taps get no weight),
    so no padded activation buffers are ever needed in the kernel.
    """
    w = np.asarray(w, np.float32)
    b = np.asarray(b, np.float32)
    cout, cin, ksz = w.shape
    lout = lin + 2 * pad - ksz + 1
    wl = np.zeros((cin * lin, cout * lout), np.float32)
    for co in range(cout):
        for ci in range(cin):
            for kk in range(ksz):
                for l in range(lout):
                    j = l + kk - pad
                    if 0 <= j < lin:
                        wl[ci * lin + j, co * lout + l] += w[co, ci, kk]
    wbig = np.zeros((k_pad, n_pad), np.float32)
    brow = np.zeros((1, n_pad), np.float32)
    for a in range(copies):
        r0, c0 = a * cin * lin, a * cout * lout
        wbig[r0:r0 + cin * lin, c0:c0 + cout * lout] = wl
        for co in range(cout):
            brow[0, c0 + co * lout: c0 + (co + 1) * lout] = b[co]
    return wbig, brow


def pack_params(p, L):
    """One-time weight layout transforms (banded conv matrices, gate slicing,
    transposes, 128-lane padding), hoisted out of the hot path."""
    l0o, l1o, lf = L + 2, L + 2, L - 4
    n0p = _ru(5 * C0 * l0o)
    n1p = _ru(5 * C1 * l1o)
    n2p = _ru(5 * C2 * lf)

    w0big, b0r = _banded_conv(p['w0'], p['b0'], L,   PAD, 5, 5 * 1 * L, n0p)
    w1big, b1r = _banded_conv(p['w1'], p['b1'], l0o, PAD, 5, n0p, n1p)
    w2big, b2r = _banded_conv(p['w2'], p['b2'], l1o, PAD, 5, n1p, n2p)

    # LSTM: drop the dead f-gate (c0 == 0) and W_hh (h0 == 0); keep i, g, o rows,
    # fold b_ih + b_hh, transpose once, pad the contraction dim to n2p.
    w_ih = np.asarray(p['w_ih'], np.float32)
    bsum = np.asarray(p['b_ih'], np.float32) + np.asarray(p['b_hh'], np.float32)
    rows = np.concatenate([w_ih[0:H], w_ih[2 * H:3 * H], w_ih[3 * H:4 * H]], axis=0)
    bias = np.concatenate([bsum[0:H], bsum[2 * H:3 * H], bsum[3 * H:4 * H]], axis=0)
    d = rows.shape[1]
    assert d == 5 * C2 * lf, "lstm_dim must equal 5*8*(L-4)"
    wiho = np.zeros((n2p, 3 * H), np.float32)
    wiho[:d, :] = rows.T

    return {
        'w0s': jnp.asarray(w0big.reshape(5, L, n0p)),     # per-branch layer-0 blocks
        'b0r': jnp.asarray(b0r),
        'w1p': jnp.asarray(w1big), 'b1r': jnp.asarray(b1r),
        'w2p': jnp.asarray(w2big), 'b2r': jnp.asarray(b2r),
        'wiho': jnp.asarray(wiho),                        # (n2p, 3H)
        'biho': jnp.asarray(bias.reshape(1, 3 * H)),
        'wfc': jnp.asarray(np.asarray(p['w_fc'], np.float32).reshape(1, H)),
        'bfc': jnp.asarray(np.asarray(p['b_fc'], np.float32).reshape(1, 1)),
    }


if __name__ == "__main__":
    B, L = 2, 16
    lstm_dim = 5 * C2 * (L - 4)          # == 480, the lstm_dim the module expects
    key = jax.random.PRNGKey(0)
    kx, kparam = jax.random.split(key)
    xkeys = jax.random.split(kx, 5)
    x1, x2, x3, x4, x5 = (jax.random.normal(k, (B, L), jnp.float32) for k in xkeys)
    kp = pack_params(init_params(kparam, lstm_dim), L)

    out = jax.jit(wheatgp_forward)(kp, x1, x2, x3, x4, x5)
    out = jax.block_until_ready(out)
    assert out.shape == (B, 1) and out.dtype == jnp.float32
    print("KERNEL_OK")
</pallas_src>

<mosaic_0001>
module attributes {stable_mosaic.version = 11 : i64} {
  func.func @_fused_kernel(%arg0: i32, %arg1: memref<2x16xf32, #tpu.memory_space<vmem>>, %arg2: memref<2x16xf32, #tpu.memory_space<vmem>>, %arg3: memref<2x16xf32, #tpu.memory_space<vmem>>, %arg4: memref<2x16xf32, #tpu.memory_space<vmem>>, %arg5: memref<2x16xf32, #tpu.memory_space<vmem>>, %arg6: memref<5x16x256xf32, #tpu.memory_space<vmem>>, %arg7: memref<1x256xf32, #tpu.memory_space<vmem>>, %arg8: memref<256x384xf32, #tpu.memory_space<vmem>>, %arg9: memref<1x384xf32, #tpu.memory_space<vmem>>, %arg10: memref<384x512xf32, #tpu.memory_space<vmem>>, %arg11: memref<1x512xf32, #tpu.memory_space<vmem>>, %arg12: memref<512x384xf32, #tpu.memory_space<vmem>>, %arg13: memref<1x384xf32, #tpu.memory_space<vmem>>, %arg14: memref<1x128xf32, #tpu.memory_space<vmem>>, %arg15: memref<1x1xf32, #tpu.memory_space<vmem>>, %arg16: memref<2x1xf32, #tpu.memory_space<vmem>>) attributes {dimension_semantics = [#tpu.dimension_semantics<parallel>], iteration_bounds = array<i64: 1>, scalar_prefetch = 0 : i64, scratch_operands = 0 : i64, tpu.core_type = #tpu.core_type<tc>, window_params = [{transform_indices = @transform_0, window_bounds = array<i64: 2, 16>}, {transform_indices = @transform_1, window_bounds = array<i64: 2, 16>}, {transform_indices = @transform_2, window_bounds = array<i64: 2, 16>}, {transform_indices = @transform_3, window_bounds = array<i64: 2, 16>}, {transform_indices = @transform_4, window_bounds = array<i64: 2, 16>}, {pipeline_mode = #tpu.pipeline_mode<synchronous>, transform_indices = @transform_5, window_bounds = array<i64: 5, 16, 256>}, {pipeline_mode = #tpu.pipeline_mode<synchronous>, transform_indices = @transform_6, window_bounds = array<i64: 1, 256>}, {pipeline_mode = #tpu.pipeline_mode<synchronous>, transform_indices = @transform_7, window_bounds = array<i64: 256, 384>}, {pipeline_mode = #tpu.pipeline_mode<synchronous>, transform_indices = @transform_8, window_bounds = array<i64: 1, 384>}, {pipeline_mode = #tpu.pipeline_mode<synchronous>, transform_indices = @transform_9, window_bounds = array<i64: 384, 512>}, {pipeline_mode = #tpu.pipeline_mode<synchronous>, transform_indices = @transform_10, window_bounds = array<i64: 1, 512>}, {pipeline_mode = #tpu.pipeline_mode<synchronous>, transform_indices = @transform_11, window_bounds = array<i64: 512, 384>}, {pipeline_mode = #tpu.pipeline_mode<synchronous>, transform_indices = @transform_12, window_bounds = array<i64: 1, 384>}, {pipeline_mode = #tpu.pipeline_mode<synchronous>, transform_indices = @transform_13, window_bounds = array<i64: 1, 128>}, {pipeline_mode = #tpu.pipeline_mode<synchronous>, transform_indices = @transform_14, window_bounds = array<i64: 1, 1>}, {transform_indices = @transform_15, window_bounds = array<i64: 2, 1>}]} {
    %c0 = arith.constant 0 : index
    %c0_0 = arith.constant 0 : index
    %0 = vector.load %arg7[%c0, %c0_0] : memref<1x256xf32, #tpu.memory_space<vmem>>, vector<1x256xf32>
    %c0_1 = arith.constant 0 : index
    %c0_2 = arith.constant 0 : index
    %1 = vector.load %arg1[%c0_1, %c0_2] : memref<2x16xf32, #tpu.memory_space<vmem>>, vector<2x16xf32>
    %c0_3 = arith.constant 0 : index
    %c0_4 = arith.constant 0 : index
    %c0_5 = arith.constant 0 : index
    %2 = vector.load %arg6[%c0_3, %c0_4, %c0_5] : memref<5x16x256xf32, #tpu.memory_space<vmem>>, vector<1x16x256xf32>
    %3 = vector.shape_cast %2 : vector<1x16x256xf32> to vector<16x256xf32>
    %cst = arith.constant dense<0.000000e+00> : vector<2x256xf32>
    %4 = tpu.matmul %1, %3, %cst {dimension_numbers = #tpu.dot_dimension_numbers<[1], [0], [0], [1], [0, 0, 1, 1], [], []>} : vector<2x16xf32>, vector<16x256xf32>, vector<2x256xf32> -> vector<2x256xf32>
    %5 = vector.broadcast %0 : vector<1x256xf32> to vector<2x256xf32>
    %6 = arith.addf %5, %4 : vector<2x256xf32>
    %c0_6 = arith.constant 0 : index
    %c0_7 = arith.constant 0 : index
    %7 = vector.load %arg2[%c0_6, %c0_7] : memref<2x16xf32, #tpu.memory_space<vmem>>, vector<2x16xf32>
    %c1 = arith.constant 1 : index
    %c0_8 = arith.constant 0 : index
    %c0_9 = arith.constant 0 : index
    %8 = vector.load %arg6[%c1, %c0_8, %c0_9] : memref<5x16x256xf32, #tpu.memory_space<vmem>>, vector<1x16x256xf32>
    %9 = vector.shape_cast %8 : vector<1x16x256xf32> to vector<16x256xf32>
    %cst_10 = arith.constant dense<0.000000e+00> : vector<2x256xf32>
    %10 = tpu.matmul %7, %9, %cst_10 {dimension_numbers = #tpu.dot_dimension_numbers<[1], [0], [0], [1], [0, 0, 1, 1], [], []>} : vector<2x16xf32>, vector<16x256xf32>, vector<2x256xf32> -> vector<2x256xf32>
    %11 = arith.addf %6, %10 : vector<2x256xf32>
    %c0_11 = arith.constant 0 : index
    %c0_12 = arith.constant 0 : index
    %12 = vector.load %arg3[%c0_11, %c0_12] : memref<2x16xf32, #tpu.memory_space<vmem>>, vector<2x16xf32>
    %c2 = arith.constant 2 : index
    %c0_13 = arith.constant 0 : index
    %c0_14 = arith.constant 0 : index
    %13 = vector.load %arg6[%c2, %c0_13, %c0_14] : memref<5x16x256xf32, #tpu.memory_space<vmem>>, vector<1x16x256xf32>
    %14 = vector.shape_cast %13 : vector<1x16x256xf32> to vector<16x256xf32>
    %cst_15 = arith.constant dense<0.000000e+00> : vector<2x256xf32>
    %15 = tpu.matmul %12, %14, %cst_15 {dimension_numbers = #tpu.dot_dimension_numbers<[1], [0], [0], [1], [0, 0, 1, 1], [], []>} : vector<2x16xf32>, vector<16x256xf32>, vector<2x256xf32> -> vector<2x256xf32>
    %16 = arith.addf %11, %15 : vector<2x256xf32>
    %c0_16 = arith.constant 0 : index
    %c0_17 = arith.constant 0 : index
    %17 = vector.load %arg4[%c0_16, %c0_17] : memref<2x16xf32, #tpu.memory_space<vmem>>, vector<2x16xf32>
    %c3 = arith.constant 3 : index
    %c0_18 = arith.constant 0 : index
    %c0_19 = arith.constant 0 : index
    %18 = vector.load %arg6[%c3, %c0_18, %c0_19] : memref<5x16x256xf32, #tpu.memory_space<vmem>>, vector<1x16x256xf32>
    %19 = vector.shape_cast %18 : vector<1x16x256xf32> to vector<16x256xf32>
    %cst_20 = arith.constant dense<0.000000e+00> : vector<2x256xf32>
    %20 = tpu.matmul %17, %19, %cst_20 {dimension_numbers = #tpu.dot_dimension_numbers<[1], [0], [0], [1], [0, 0, 1, 1], [], []>} : vector<2x16xf32>, vector<16x256xf32>, vector<2x256xf32> -> vector<2x256xf32>
    %21 = arith.addf %16, %20 : vector<2x256xf32>
    %c0_21 = arith.constant 0 : index
    %c0_22 = arith.constant 0 : index
    %22 = vector.load %arg5[%c0_21, %c0_22] : memref<2x16xf32, #tpu.memory_space<vmem>>, vector<2x16xf32>
    %c4 = arith.constant 4 : index
    %c0_23 = arith.constant 0 : index
    %c0_24 = arith.constant 0 : index
    %23 = vector.load %arg6[%c4, %c0_23, %c0_24] : memref<5x16x256xf32, #tpu.memory_space<vmem>>, vector<1x16x256xf32>
    %24 = vector.shape_cast %23 : vector<1x16x256xf32> to vector<16x256xf32>
    %cst_25 = arith.constant dense<0.000000e+00> : vector<2x256xf32>
    %25 = tpu.matmul %22, %24, %cst_25 {dimension_numbers = #tpu.dot_dimension_numbers<[1], [0], [0], [1], [0, 0, 1, 1], [], []>} : vector<2x16xf32>, vector<16x256xf32>, vector<2x256xf32> -> vector<2x256xf32>
    %26 = arith.addf %21, %25 : vector<2x256xf32>
    %cst_26 = arith.constant 0.000000e+00 : f32
    %27 = vector.broadcast %cst_26 : f32 to vector<2x256xf32>
    %28 = arith.maximumf %26, %27 : vector<2x256xf32>
    %c0_27 = arith.constant 0 : index
    %c0_28 = arith.constant 0 : index
    %29 = vector.load %arg8[%c0_27, %c0_28] : memref<256x384xf32, #tpu.memory_space<vmem>>, vector<256x384xf32>
    %cst_29 = arith.constant dense<0.000000e+00> : vector<2x384xf32>
    %30 = tpu.matmul %28, %29, %cst_29 {dimension_numbers = #tpu.dot_dimension_numbers<[1], [0], [0], [1], [0, 0, 1, 1], [], []>} : vector<2x256xf32>, vector<256x384xf32>, vector<2x384xf32> -> vector<2x384xf32>
    %c0_30 = arith.constant 0 : index
    %c0_31 = arith.constant 0 : index
    %31 = vector.load %arg9[%c0_30, %c0_31] : memref<1x384xf32, #tpu.memory_space<vmem>>, vector<1x384xf32>
    %32 = vector.broadcast %31 : vector<1x384xf32> to vector<2x384xf32>
    %33 = arith.addf %30, %32 : vector<2x384xf32>
    %cst_32 = arith.constant 0.000000e+00 : f32
    %34 = vector.broadcast %cst_32 : f32 to vector<2x384xf32>
    %35 = arith.maximumf %33, %34 : vector<2x384xf32>
    %c0_33 = arith.constant 0 : index
    %c0_34 = arith.constant 0 : index
    %36 = vector.load %arg10[%c0_33, %c0_34] : memref<384x512xf32, #tpu.memory_space<vmem>>, vector<384x512xf32>
    %cst_35 = arith.constant dense<0.000000e+00> : vector<2x512xf32>
    %37 = tpu.matmul %35, %36, %cst_35 {dimension_numbers = #tpu.dot_dimension_numbers<[1], [0], [0], [1], [0, 0, 1, 1], [], []>} : vector<2x384xf32>, vector<384x512xf32>, vector<2x512xf32> -> vector<2x512xf32>
    %c0_36 = arith.constant 0 : index
    %c0_37 = arith.constant 0 : index
    %38 = vector.load %arg11[%c0_36, %c0_37] : memref<1x512xf32, #tpu.memory_space<vmem>>, vector<1x512xf32>
    %39 = vector.broadcast %38 : vector<1x512xf32> to vector<2x512xf32>
    %40 = arith.addf %37, %39 : vector<2x512xf32>
    %cst_38 = arith.constant 0.000000e+00 : f32
    %41 = vector.broadcast %cst_38 : f32 to vector<2x512xf32>
    %42 = arith.maximumf %40, %41 : vector<2x512xf32>
    %c0_39 = arith.constant 0 : index
    %c0_40 = arith.constant 0 : index
    %43 = vector.load %arg12[%c0_39, %c0_40] : memref<512x384xf32, #tpu.memory_space<vmem>>, vector<512x384xf32>
    %cst_41 = arith.constant dense<0.000000e+00> : vector<2x384xf32>
    %44 = tpu.matmul %42, %43, %cst_41 {dimension_numbers = #tpu.dot_dimension_numbers<[1], [0], [0], [1], [0, 0, 1, 1], [], []>} : vector<2x512xf32>, vector<512x384xf32>, vector<2x384xf32> -> vector<2x384xf32>
    %c0_42 = arith.constant 0 : index
    %c0_43 = arith.constant 0 : index
    %45 = vector.load %arg13[%c0_42, %c0_43] : memref<1x384xf32, #tpu.memory_space<vmem>>, vector<1x384xf32>
    %46 = vector.broadcast %45 : vector<1x384xf32> to vector<2x384xf32>
    %47 = arith.addf %44, %46 : vector<2x384xf32>
    %48 = vector.extract_strided_slice %47 {offsets = [0, 0], sizes = [2, 128], strides = [1, 1]} : vector<2x384xf32> to vector<2x128xf32>
    %49 = arith.negf %48 : vector<2x128xf32>
    %50 = math.exp %49 : vector<2x128xf32>
    %cst_44 = arith.constant 1.000000e+00 : f32
    %51 = vector.broadcast %cst_44 : f32 to vector<2x128xf32>
    %52 = arith.addf %51, %50 : vector<2x128xf32>
    %53 = arith.divf %51, %52 : vector<2x128xf32>
    %54 = vector.extract_strided_slice %47 {offsets = [0, 128], sizes = [2, 128], strides = [1, 1]} : vector<2x384xf32> to vector<2x128xf32>
    %55 = math.tanh %54 : vector<2x128xf32>
    %56 = vector.extract_strided_slice %47 {offsets = [0, 256], sizes = [2, 128], strides = [1, 1]} : vector<2x384xf32> to vector<2x128xf32>
    %57 = arith.negf %56 : vector<2x128xf32>
    %58 = math.exp %57 : vector<2x128xf32>
    %cst_45 = arith.constant 1.000000e+00 : f32
    %59 = vector.broadcast %cst_45 : f32 to vector<2x128xf32>
    %60 = arith.addf %59, %58 : vector<2x128xf32>
    %61 = arith.divf %59, %60 : vector<2x128xf32>
    %62 = arith.mulf %53, %55 : vector<2x128xf32>
    %63 = math.tanh %62 : vector<2x128xf32>
    %64 = arith.mulf %61, %63 : vector<2x128xf32>
    %c0_46 = arith.constant 0 : index
    %c0_47 = arith.constant 0 : index
    %65 = vector.load %arg14[%c0_46, %c0_47] : memref<1x128xf32, #tpu.memory_space<vmem>>, vector<1x128xf32>
    %66 = vector.broadcast %65 : vector<1x128xf32> to vector<2x128xf32>
    %67 = arith.mulf %64, %66 : vector<2x128xf32>
    %cst_48 = arith.constant dense<0.000000e+00> : vector<2xf32>
    %68 = vector.multi_reduction <add>, %67, %cst_48 [1] : vector<2x128xf32> to vector<2xf32>
    %69 = vector.shape_cast %68 : vector<2xf32> to vector<2x1xf32>
    %c0_49 = arith.constant 0 : index
    %c0_50 = arith.constant 0 : index
    %70 = vector.load %arg15[%c0_49, %c0_50] : memref<1x1xf32, #tpu.memory_space<vmem>>, vector<1x1xf32>
    %71 = vector.broadcast %70 : vector<1x1xf32> to vector<2x1xf32>
    %72 = arith.addf %69, %71 : vector<2x1xf32>
    %c0_51 = arith.constant 0 : index
    %c0_52 = arith.constant 0 : index
    %73 = vector.load %arg16[%c0_51, %c0_52] : memref<2x1xf32, #tpu.memory_space<vmem>>, vector<2x1xf32>
    tpu.vector_store %arg16[%c0_51, %c0_52], %72 {strides = array<i32>} : memref<2x1xf32, #tpu.memory_space<vmem>>, vector<2x1xf32>,
    return
  }
  func.func @transform_0(%arg0: i32) -> (i32, i32) {
    %c0_i32 = arith.constant 0 : i32
    %c0_i32_0 = arith.constant 0 : i32
    return %arg0, %c0_i32 : i32, i32
  }
  func.func @transform_1(%arg0: i32) -> (i32, i32) {
    %c0_i32 = arith.constant 0 : i32
    %c0_i32_0 = arith.constant 0 : i32
    return %arg0, %c0_i32 : i32, i32
  }
  func.func @transform_2(%arg0: i32) -> (i32, i32) {
    %c0_i32 = arith.constant 0 : i32
    %c0_i32_0 = arith.constant 0 : i32
    return %arg0, %c0_i32 : i32, i32
  }
  func.func @transform_3(%arg0: i32) -> (i32, i32) {
    %c0_i32 = arith.constant 0 : i32
    %c0_i32_0 = arith.constant 0 : i32
    return %arg0, %c0_i32 : i32, i32
  }
  func.func @transform_4(%arg0: i32) -> (i32, i32) {
    %c0_i32 = arith.constant 0 : i32
    %c0_i32_0 = arith.constant 0 : i32
    return %arg0, %c0_i32 : i32, i32
  }
  func.func @transform_5(%arg0: i32) -> (i32, i32, i32) {
    %c0_i32 = arith.constant 0 : i32
    %c0_i32_0 = arith.constant 0 : i32
    %c0_i32_1 = arith.constant 0 : i32
    %c0_i32_2 = arith.constant 0 : i32
    return %c0_i32, %c0_i32_0, %c0_i32_1 : i32, i32, i32
  }
  func.func @transform_6(%arg0: i32) -> (i32, i32) {
    %c0_i32 = arith.constant 0 : i32
    %c0_i32_0 = arith.constant 0 : i32
    %c0_i32_1 = arith.constant 0 : i32
    return %c0_i32, %c0_i32_0 : i32, i32
  }
  func.func @transform_7(%arg0: i32) -> (i32, i32) {
    %c0_i32 = arith.constant 0 : i32
    %c0_i32_0 = arith.constant 0 : i32
    %c0_i32_1 = arith.constant 0 : i32
    return %c0_i32, %c0_i32_0 : i32, i32
  }
  func.func @transform_8(%arg0: i32) -> (i32, i32) {
    %c0_i32 = arith.constant 0 : i32
    %c0_i32_0 = arith.constant 0 : i32
    %c0_i32_1 = arith.constant 0 : i32
    return %c0_i32, %c0_i32_0 : i32, i32
  }
  func.func @transform_9(%arg0: i32) -> (i32, i32) {
    %c0_i32 = arith.constant 0 : i32
    %c0_i32_0 = arith.constant 0 : i32
    %c0_i32_1 = arith.constant 0 : i32
    return %c0_i32, %c0_i32_0 : i32, i32
  }
  func.func @transform_10(%arg0: i32) -> (i32, i32) {
    %c0_i32 = arith.constant 0 : i32
    %c0_i32_0 = arith.constant 0 : i32
    %c0_i32_1 = arith.constant 0 : i32
    return %c0_i32, %c0_i32_0 : i32, i32
  }
  func.func @transform_11(%arg0: i32) -> (i32, i32) {
    %c0_i32 = arith.constant 0 : i32
    %c0_i32_0 = arith.constant 0 : i32
    %c0_i32_1 = arith.constant 0 : i32
    return %c0_i32, %c0_i32_0 : i32, i32
  }
  func.func @transform_12(%arg0: i32) -> (i32, i32) {
    %c0_i32 = arith.constant 0 : i32
    %c0_i32_0 = arith.constant 0 : i32
    %c0_i32_1 = arith.constant 0 : i32
    return %c0_i32, %c0_i32_0 : i32, i32
  }
  func.func @transform_13(%arg0: i32) -> (i32, i32) {
    %c0_i32 = arith.constant 0 : i32
    %c0_i32_0 = arith.constant 0 : i32
    %c0_i32_1 = arith.constant 0 : i32
    return %c0_i32, %c0_i32_0 : i32, i32
  }
  func.func @transform_14(%arg0: i32) -> (i32, i32) {
    %c0_i32 = arith.constant 0 : i32
    %c0_i32_0 = arith.constant 0 : i32
    %c0_i32_1 = arith.constant 0 : i32
    return %c0_i32, %c0_i32_0 : i32, i32
  }
  func.func @transform_15(%arg0: i32) -> (i32, i32) {
    %c0_i32 = arith.constant 0 : i32
    %c0_i32_0 = arith.constant 0 : i32
    return %arg0, %c0_i32 : i32, i32
  }
}

</mosaic_0001>

<bundles_post_ra>
// kernel: wheatgp_forward.1
= control target key start
LH: loop header
LB: loop body
LE: loop exit
PB: predicated region body
PF: predicated region fallthrough
CT: control target
= control target key end

     0   :  { %s2864_s0 = inlined_call_operand.vmem [shape: f32[2,16], index: 0, kind: input, shape index: {}]   ;;  %s2865_s1 = inlined_call_operand.vmem [shape: f32[2,16], index: 1, kind: input, shape index: {}]   ;;  %s2866_s2 = inlined_call_operand.vmem [shape: f32[2,16], index: 2, kind: input, shape index: {}]   ;;  %s2867_s3 = inlined_call_operand.vmem [shape: f32[2,16], index: 3, kind: input, shape index: {}]   ;;  %s2868_s4 = inlined_call_operand.vmem [shape: f32[2,16], index: 4, kind: input, shape index: {}]   ;;  %s2869_s5 = inlined_call_operand.hbm [shape: f32[5,16,256], index: 5, kind: input, shape index: {}]   ;;  %s2870_s6 = inlined_call_operand.hbm [shape: f32[1,256], index: 6, kind: input, shape index: {}]   ;;  %s2871_s7 = inlined_call_operand.hbm [shape: f32[256,384], index: 7, kind: input, shape index: {}]   ;;  %s2872_s8 = inlined_call_operand.vmem [shape: f32[1,384], index: 8, kind: input, shape index: {}]   ;;  %s2873_s9 = inlined_call_operand.hbm [shape: f32[384,512], index: 9, kind: input, shape index: {}]   ;;  %s2874_s10 = inlined_call_operand.vmem [shape: f32[1,512], index: 10, kind: input, shape index: {}]   ;;  %s2875_s11 = inlined_call_operand.hbm [shape: f32[512,384], index: 11, kind: input, shape index: {}]   ;;  %s2876_s12 = inlined_call_operand.vmem [shape: f32[1,384], index: 12, kind: input, shape index: {}]   ;;  %s2877_s13 = inlined_call_operand.vmem [shape: f32[1,128], index: 13, kind: input, shape index: {}]   ;;  %s2878_s14 = inlined_call_operand.<no memory space> [shape: f32[1,1], index: 14, kind: input, shape index: {}]   ;;  %s2879_s15 = inlined_call_operand.vmem [shape: f32[2,1], index: 15, kind: output, shape index: {}]  }
   0x1   :  { %v20_v0 = vstv %s2878_s14 }
   0x2   :  { %21 = vst [vmem:[#allocation2] sm:$0x1] %v20_v0 }
   0x3   :  { %22 = vsyncpa [#allocation4], 0 }
   0x4   :  { %23 = vsyncpa [#allocation6], 0 }
   0x5   :  { %24 = vsyncpa [#allocation9], 0  ;;  %s2613_s20 = smov [#allocation5]   ;;  %s2614_s22 = smov [#allocation8]  }
   0x6   :  { %s53_s21 = sshll.u32 %s2613_s20, 4  ;;  %s76_s23 = sshll.u32 %s2614_s22, 4  ;;  %s54_s21 = int_to_ptr.vmem [resolvable:$true] %s53_s21  ;;  %s2708_s23 = int_to_ptr.vmem [resolvable:$true] %s76_s23 }
   0x7   :  { %s2497_s26 = scalar_lea.hbm %s2870_s6, 32 }
   0x8   :  { %p2498_p0 = scmp.ne.s32.totalorder %s2870_s6, %s2497_s26  ;;  %p2501_p1 = scmp.lt.u32.totalorder %s2497_s26, %s2870_s6 }
   0xa   :  { %p2503_p2 = pnand %p2501_p1, %p2498_p0 }
   0xc   :  { %2506 = shalt.err (!%p2503_p2)
}
   0xd   :  { %s2507_s30 = scalar_lea.vmem %s54_s21, 32  ;;  %p2512_p4 = scmp.lt.s32.totalorder %s54_s21, %s54_s21 }
   0xe   :  { %p2508_p3 = scmp.ne.s32.totalorder %s54_s21, %s2507_s30  ;;  %p2513_p5 = scmp.lt.s32.totalorder %s2507_s30, %s2507_s30 }
  0x10   :  { %p2514_p6 = por %p2513_p5, %p2512_p4 }
  0x12   :  { %p2515_p7 = pnand %p2514_p6, %p2508_p3 }
  0x14   :  { %2518 = shalt.err (!%p2515_p7)
}
  0x15   :  { %56 = dma.hbm_to_vmem [thread:$0]  %s2870_s6, 32, %s54_s21, [#allocation6]  }
  0x16   :  { %s2519_s20 = scalar_lea.hbm %s2873_s9, 24576 }
  0x17   :  { %p2520_p8 = scmp.ne.s32.totalorder %s2873_s9, %s2519_s20  ;;  %p2523_p9 = scmp.lt.u32.totalorder %s2519_s20, %s2873_s9 }
  0x19   :  { %p2525_p10 = pnand %p2523_p9, %p2520_p8 }
  0x1b   :  { %2528 = shalt.err (!%p2525_p10)
}
  0x1c   :  { %s2529_s27 = scalar_lea.vmem %s2708_s23, 24576  ;;  %p2534_p12 = scmp.lt.s32.totalorder %s2708_s23, %s2708_s23 }
  0x1d   :  { %p2530_p11 = scmp.ne.s32.totalorder %s2708_s23, %s2529_s27  ;;  %p2535_p13 = scmp.lt.s32.totalorder %s2529_s27, %s2529_s27 }
  0x1f   :  { %p2536_p0 = por %p2535_p13, %p2534_p12 }
  0x21   :  { %p2537_p1 = pnand %p2536_p0, %p2530_p11 }
  0x23   :  { %2540 = shalt.err (!%p2537_p1)
}
  0x24   :  { %s2615_s6 = smov 512   ;;  %s2616_s21 = smov 32  }
  0x25   :  { %82 = dma.hbm_to_vmem [thread:$0]  %s2873_s9, 24576, %s2708_s23, [#allocation9], %s2615_s6, %s2615_s6, %s2616_s21  }
  0x26   :  { %s2617_s29 = smov [#allocation3]   ;;  %s2541_s18 = scalar_lea.hbm %s2869_s5, 2560 }
  0x27   :  { %s40_s30 = sshll.u32 %s2617_s29, 4  ;;  %p2542_p2 = scmp.ne.s32.totalorder %s2869_s5, %s2541_s18  ;;  %s41_s30 = int_to_ptr.vmem [resolvable:$true] %s40_s30 }
  0x28   :  { %p2545_p3 = scmp.lt.u32.totalorder %s2541_s18, %s2869_s5 }
  0x2a   :  { %p2547_p4 = pnand %p2545_p3, %p2542_p2 }
  0x2c   :  { %2550 = shalt.err (!%p2547_p4)
}
  0x2d   :  { %s2551_s25 = scalar_lea.vmem %s41_s30, 2560  ;;  %p2556_p6 = scmp.lt.s32.totalorder %s41_s30, %s41_s30 }
  0x2e   :  { %p2552_p5 = scmp.ne.s32.totalorder %s41_s30, %s2551_s25  ;;  %p2557_p7 = scmp.lt.s32.totalorder %s2551_s25, %s2551_s25 }
  0x30   :  { %p2558_p8 = por %p2557_p7, %p2556_p6 }
  0x32   :  { %p2559_p9 = pnand %p2558_p8, %p2552_p5 }
  0x34   :  { %2562 = shalt.err (!%p2559_p9)
}
  0x35   :  { %s2618_s9 = smov 256   ;;  %s2619_s23 = smov 16  }
  0x36   :  { %46 = dma.hbm_to_vmem [thread:$0]  %s2869_s5, 2560, %s41_s30, [#allocation4], %s2618_s9, %s2618_s9, %s2619_s23  }
  0x37   :  { %s2620_s6 = smov [#allocation7]   ;;  %s2563_s29 = scalar_lea.hbm %s2871_s7, 12288 }
  0x38   :  { %s62_s21 = sshll.u32 %s2620_s6, 4  ;;  %p2564_p10 = scmp.ne.s32.totalorder %s2871_s7, %s2563_s29  ;;  %s63_s21 = int_to_ptr.vmem [resolvable:$true] %s62_s21 }
  0x39   :  { %p2567_p11 = scmp.lt.u32.totalorder %s2563_s29, %s2871_s7 }
  0x3b   :  { %p2569_p12 = pnand %p2567_p11, %p2564_p10 }
  0x3d   :  { %2572 = shalt.err (!%p2569_p12)
}
  0x3e   :  { %s2573_s20 = scalar_lea.vmem %s63_s21, 12288  ;;  %p2578_p0 = scmp.lt.s32.totalorder %s63_s21, %s63_s21 }
  0x3f   :  { %p2574_p13 = scmp.ne.s32.totalorder %s63_s21, %s2573_s20  ;;  %p2579_p1 = scmp.lt.s32.totalorder %s2573_s20, %s2573_s20 }
  0x41   :  { %p2580_p2 = por %p2579_p1, %p2578_p0 }
  0x43   :  { %p2581_p3 = pnand %p2580_p2, %p2574_p13 }
  0x45   :  { %2584 = shalt.err (!%p2581_p3)
}
  0x46   :  { %s2621_s5 = smov 384   ;;  %s2622_s30 = smov 24  }
  0x47   :  { %68 = dma.hbm_to_vmem [thread:$0]  %s2871_s7, 12288, %s63_s21, [#allocation6], %s2621_s5, %s2621_s5, %s2622_s30  }
  0x48   :  { %s2623_s25 = smov [#allocation10]   ;;  %s2585_s27 = scalar_lea.hbm %s2875_s11, 24576 }
  0x49   :  { %s90_s9 = sshll.u32 %s2623_s25, 4  ;;  %p2586_p4 = scmp.ne.s32.totalorder %s2875_s11, %s2585_s27  ;;  %s91_s9 = int_to_ptr.vmem [resolvable:$true] %s90_s9 }
  0x4a   :  { %p2589_p5 = scmp.lt.u32.totalorder %s2585_s27, %s2875_s11 }
  0x4c   :  { %p2591_p6 = pnand %p2589_p5, %p2586_p4 }
  0x4e   :  { %2594 = shalt.err (!%p2591_p6)
}
  0x4f   :  { %s2595_s16 = scalar_lea.vmem %s91_s9, 24576  ;;  %p2600_p8 = scmp.lt.s32.totalorder %s91_s9, %s91_s9 }
  0x50   :  { %p2596_p7 = scmp.ne.s32.totalorder %s91_s9, %s2595_s16  ;;  %p2601_p9 = scmp.lt.s32.totalorder %s2595_s16, %s2595_s16 }
  0x52   :  { %p2602_p10 = por %p2601_p9, %p2600_p8 }
  0x54   :  { %p2603_p11 = pnand %p2602_p10, %p2596_p7 }
  0x56   :  { %2606 = shalt.err (!%p2603_p11)
}
  0x57   :  { %96 = dma.hbm_to_vmem [thread:$0]  %s2875_s11, 24576, %s91_s9, [#allocation9], %s2621_s5, %s2621_s5, %s2622_s30  }
  0x58   :  { %2607 = dma.done.wait [#allocation4], 2560  }
  0x59   :  { %2608 = vsyncadd [#allocation4], 4294964736 }
  0x5a   :  { %2609 = dma.done.wait [#allocation6], 12320  }
  0x5b   :  { %2610 = vsyncadd [#allocation6], 4294954976 }
  0x5c   :  { %2611 = dma.done.wait [#allocation9], 49152  }
  0x5d   :  { %2612 = vsyncadd [#allocation9], 4294918144  ;;  %v2624_v1 = vmov 0.0   ;;  %v121_v2 = vld [vmem:[#allocation3 + $0x8] sm:$0xff]  ;;  %v123_v3 = vld [vmem:[#allocation3 + $0x18] sm:$0xff]  ;;  %vm124_vm0 = vcmask 130048  }
  0x5e   :  { %192 = vmatprep.mubr.f32.mxu0 %v2624_v1  ;;  %v120_v4 = vld [vmem:[#allocation3] sm:$0xff]  ;;  %v1951_v5 = vpack.c.bf16 %v123_v3, %v121_v2  ;;  %v122_v6 = vld [vmem:[#allocation3 + $0x10] sm:$0xff]  ;;  %v215_v7 = vld [vmem:[#allocation3 + $0x28] sm:$0xff]  ;;  %vm1816_vm1 = vcmask 1041408   ;;  %vm1828_vm2 = vcmask 1024  }
  0x5f   :  { %v1953_v8 = vpack.c.bf16 %v122_v6, %v120_v4  ;;  %v217_v9 = vld [vmem:[#allocation3 + $0x38] sm:$0xff]  ;;  %v214_v10 = vld [vmem:[#allocation3 + $0x20] sm:$0xff]  ;;  %v216_v11 = vld [vmem:[#allocation3 + $0x30] sm:$0xff] }
  0x60   :  { %1952 = vmatprep.subr.bf16.mxu0 %v1951_v5  ;;  %v1955_v12 = vpack.c.bf16 %v217_v9, %v215_v7  ;;  %v297_v13 = vld [vmem:[#allocation3 + $0x48] sm:$0xff]  ;;  %v299_v14 = vld [vmem:[#allocation3 + $0x58] sm:$0xff]  ;;  %v1957_v16 = vpack.c.bf16 %v216_v11, %v214_v10  ;;  %v296_v18 = vld [vmem:[#allocation3 + $0x40] sm:$0xff] }
  0x61   :  { %1954 = vmatpush1.bf16.msra.mxu0 %v1953_v8  ;;  %v119_v15 = vld [vmem:[%s2864_s0] sm:$0x3]  ;;  %v1959_v17 = vpack.c.bf16 %v299_v14, %v297_v13  ;;  %v298_v19 = vld [vmem:[#allocation3 + $0x50] sm:$0xff]  ;;  %v379_v20 = vld [vmem:[#allocation3 + $0x68] sm:$0xff] }
  0x62   :  { %1956 = vmatprep.subr.bf16.mxu0 %v1955_v12  ;;  %v381_v21 = vld [vmem:[#allocation3 + $0x78] sm:$0xff]  ;;  %v543_v22 = vld [vmem:[#allocation7 + $0x8] sm:$0xff]  ;;  %v546_v23 = vld [vmem:[#allocation7 + $0x20] sm:$0xff]  ;;  %v1961_v36 = vpack.c.bf16 %v298_v19, %v296_v18 }
  0x63   :  { %v1971_v24 = vpack.c.bf16 %v546_v23, %v543_v22  ;;  %v542_v25 = vld [vmem:[#allocation7] sm:$0xff]  ;;  %v545_v26 = vld [vmem:[#allocation7 + $0x18] sm:$0xff]  ;;  %v552_v29 = vld [vmem:[#allocation7 + $0x50] sm:$0xff]  ;;  %v1963_v37 = vpack.c.bf16 %v381_v21, %v379_v20 }
  0x64   :  { %1837 = vmatmul.mubr.msk.f32.vlgmr.msra.gmra.mrb[0].mxu0 %vm124_vm0, %v119_v15  ;;  %v549_v27 = vld [vmem:[#allocation7 + $0x38] sm:$0xff]  ;;  %v1973_v28 = vpack.c.bf16 %v545_v26, %v542_v25  ;;  %v548_v30 = vld [vmem:[#allocation7 + $0x30] sm:$0xff]  ;;  %v551_v31 = vld [vmem:[#allocation7 + $0x48] sm:$0xff] }
  0x65   :  { %1958 = vmatpush1.bf16.msra.mxu0 %v1957_v16  ;;  %285 = vmatprep.mubr.f32.mxu0 %v2624_v1  ;;  %v1975_v32 = vpack.c.bf16 %v552_v29, %v549_v27  ;;  %v555_v33 = vld [vmem:[#allocation7 + $0x68] sm:$0xff]  ;;  %v558_v34 = vld [vmem:[#allocation7 + $0x80] sm:$0xff]  ;;  %v212_v35 = vld [vmem:[%s2865_s1] sm:$0x3]  ;;  %v1977_v38 = vpack.c.bf16 %v551_v31, %v548_v30 }
  0x66   :  { %1960 = vmatprep.subr.bf16.mxu0 %v1959_v17  ;;  %1972 = vmatprep.subr.bf16.mxu1 %v1971_v24  ;;  %v1979_v39 = vpack.c.bf16 %v558_v34, %v555_v33  ;;  %v554_v40 = vld [vmem:[#allocation7 + $0x60] sm:$0xff]  ;;  %v557_v41 = vld [vmem:[#allocation7 + $0x78] sm:$0xff]  ;;  %v564_v43 = vld [vmem:[#allocation7 + $0xb0] sm:$0xff] }
  0x67   :  { %1974 = vmatpush1.bf16.msra.mxu1 %v1973_v28  ;;  %v561_v42 = vld [vmem:[#allocation7 + $0x98] sm:$0xff]  ;;  %v380_v45 = vld [vmem:[#allocation3 + $0x70] sm:$0xff]  ;;  %v461_v46 = vld [vmem:[#allocation3 + $0x88] sm:$0xff]  ;;  %v1981_v47 = vpack.c.bf16 %v557_v41, %v554_v40 }
  0x68   :  { %1976 = vmatprep.subr.bf16.mxu1 %v1975_v32  ;;  %v378_v44 = vld [vmem:[#allocation3 + $0x60] sm:$0xff]  ;;  %v463_v48 = vld [vmem:[#allocation3 + $0x98] sm:$0xff]  ;;  %v1983_v49 = vpack.c.bf16 %v564_v43, %v561_v42  ;;  %v563_v51 = vld [vmem:[#allocation7 + $0xa8] sm:$0xff] }
  0x69   :  { %v560_v50 = vld [vmem:[#allocation7 + $0x90] sm:$0xff]  ;;  %v567_v52 = vld [vmem:[#allocation7 + $0xc8] sm:$0xff]  ;;  %v570_v53 = vld [vmem:[#allocation7 + $0xe0] sm:$0xff]  ;;  %v1965_v55 = vpack.c.bf16 %v380_v45, %v378_v44  ;;  %v1967_v56 = vpack.c.bf16 %v463_v48, %v461_v46 }
  0x6a   :  { %v294_v54 = vld [vmem:[%s2866_s2] sm:$0x3]  ;;  %v1985_v57 = vpack.c.bf16 %v563_v51, %v560_v50  ;;  %v1987_v58 = vpack.c.bf16 %v570_v53, %v567_v52  ;;  %v566_v59 = vld [vmem:[#allocation7 + $0xc0] sm:$0xff]  ;;  %v576_v62 = vld [vmem:[#allocation7 + $0x110] sm:$0xff] }
  0x6b   :  { %1978 = vmatpush1.bf16.msra.mxu1 %v1977_v38  ;;  %v569_v60 = vld [vmem:[#allocation7 + $0xd8] sm:$0xff]  ;;  %v462_v0 = vld [vmem:[#allocation3 + $0x90] sm:$0xff]  ;;  %v582_v7 = vld [vmem:[#allocation7 + $0x140] sm:$0xff] }
  0x6c   :  { %1838 = vmatmul.mubr.msk.f32.vlgmr.msra.gmra.mrb[0].mxu0 %vm124_vm0, %v212_v35  ;;  %1980 = vmatprep.subr.bf16.mxu1 %v1979_v39  ;;  %v573_v61 = vld [vmem:[#allocation7 + $0xf8] sm:$0xff]  ;;  %v1989_v2 = vpack.c.bf16 %v569_v60, %v566_v59  ;;  %v572_v4 = vld [vmem:[#allocation7 + $0xf0] sm:$0xff]  ;;  %v575_v5 = vld [vmem:[#allocation7 + $0x108] sm:$0xff] }
  0x6d   :  { %1962 = vmatpush1.bf16.msra.mxu0 %v1961_v36  ;;  %367 = vmatprep.mubr.f32.mxu0 %v2624_v1  ;;  %v460_v63 = vld [vmem:[#allocation3 + $0x80] sm:$0xff]  ;;  %v1991_v3 = vpack.c.bf16 %v576_v62, %v573_v61  ;;  %v579_v6 = vld [vmem:[#allocation7 + $0x128] sm:$0xff]  ;;  %v1993_v10 = vpack.c.bf16 %v575_v5, %v572_v4  ;;  %v588_v15 = vld [vmem:[#allocation7 + $0x170] sm:$0xff] }
  0x6e   :  { %1964 = vmatprep.subr.bf16.mxu0 %v1963_v37  ;;  %v376_v8 = vld [vmem:[%s2867_s3] sm:$0x3]  ;;  %v1969_v9 = vpack.c.bf16 %v462_v0, %v460_v63  ;;  %v1995_v11 = vpack.c.bf16 %v582_v7, %v579_v6  ;;  %v578_v12 = vld [vmem:[#allocation7 + $0x120] sm:$0xff]  ;;  %v584_v18 = vld [vmem:[#allocation7 + $0x150] sm:$0xff] }
  0x6f   :  { %1982 = vmatpush1.bf16.msra.mxu1 %v1981_v47  ;;  %v581_v13 = vld [vmem:[#allocation7 + $0x138] sm:$0xff]  ;;  %v587_v19 = vld [vmem:[#allocation7 + $0x168] sm:$0xff]  ;;  %v594_v21 = vld [vmem:[#allocation7 + $0x1a0] sm:$0xff] }
  0x70   :  { %1984 = vmatprep.subr.bf16.mxu1 %v1983_v49  ;;  %v585_v14 = vld [vmem:[#allocation7 + $0x158] sm:$0xff]  ;;  %v1997_v16 = vpack.c.bf16 %v581_v13, %v578_v12  ;;  %v591_v20 = vld [vmem:[#allocation7 + $0x188] sm:$0xff]  ;;  %v2001_v23 = vpack.c.bf16 %v587_v19, %v584_v18  ;;  %v590_v25 = vld [vmem:[#allocation7 + $0x180] sm:$0xff] }
  0x71   :  { %v1999_v17 = vpack.c.bf16 %v588_v15, %v585_v14  ;;  %v458_v22 = vld [vmem:[%s2868_s4] sm:$0x3]  ;;  %v2003_v24 = vpack.c.bf16 %v594_v21, %v591_v20  ;;  %v600_v28 = vld [vmem:[#allocation7 + $0x1d0] sm:$0xff]  ;;  %v599_v32 = vld [vmem:[#allocation7 + $0x1c8] sm:$0xff] }
  0x72   :  { %v593_v26 = vld [vmem:[#allocation7 + $0x198] sm:$0xff]  ;;  %v596_v31 = vld [vmem:[#allocation7 + $0x1b0] sm:$0xff]  ;;  %v603_v33 = vld [vmem:[#allocation7 + $0x1e8] sm:$0xff] }
  0x73   :  { %1986 = vmatpush1.bf16.msra.mxu1 %v1985_v57  ;;  %v597_v27 = vld [vmem:[#allocation7 + $0x1b8] sm:$0xff]  ;;  %v2005_v29 = vpack.c.bf16 %v593_v26, %v590_v25  ;;  %v606_v34 = vld [vmem:[#allocation7 + $0x200] sm:$0xff]  ;;  %v2009_v35 = vpack.c.bf16 %v599_v32, %v596_v31  ;;  %v612_v40 = vld [vmem:[#allocation7 + $0x230] sm:$0xff] }
  0x74   :  { %1839 = vmatmul.mubr.msk.f32.vlgmr.msra.gmra.mrb[0].mxu0 %vm124_vm0, %v294_v54  ;;  %1988 = vmatprep.subr.bf16.mxu1 %v1987_v58  ;;  %v2007_v30 = vpack.c.bf16 %v600_v28, %v597_v27  ;;  %v2011_v36 = vpack.c.bf16 %v606_v34, %v603_v33  ;;  %v602_v37 = vld [vmem:[#allocation7 + $0x1e0] sm:$0xff]  ;;  %v605_v38 = vld [vmem:[#allocation7 + $0x1f8] sm:$0xff]  ;;  %v608_v43 = vld [vmem:[#allocation7 + $0x210] sm:$0xff] }
  0x75   :  { %1966 = vmatpush1.bf16.msra.mxu0 %v1965_v55  ;;  %449 = vmatprep.mubr.f32.mxu0 %v2624_v1  ;;  %v609_v39 = vld [vmem:[#allocation7 + $0x218] sm:$0xff]  ;;  %v2013_v41 = vpack.c.bf16 %v605_v38, %v602_v37  ;;  %v611_v44 = vld [vmem:[#allocation7 + $0x228] sm:$0xff]  ;;  %v618_v46 = vld [vmem:[#allocation7 + $0x260] sm:$0xff] }
  0x76   :  { %1968 = vmatprep.subr.bf16.mxu0 %v1967_v56  ;;  %v2015_v42 = vpack.c.bf16 %v612_v40, %v609_v39  ;;  %v615_v45 = vld [vmem:[#allocation7 + $0x248] sm:$0xff]  ;;  %v2017_v47 = vpack.c.bf16 %v611_v44, %v608_v43  ;;  %v614_v49 = vld [vmem:[#allocation7 + $0x240] sm:$0xff]  ;;  %v617_v50 = vld [vmem:[#allocation7 + $0x258] sm:$0xff] }
  0x77   :  { %1990 = vmatpush1.bf16.msra.mxu1 %v1989_v2  ;;  %v2019_v48 = vpack.c.bf16 %v618_v46, %v615_v45  ;;  %v621_v51 = vld [vmem:[#allocation7 + $0x278] sm:$0xff]  ;;  %v624_v52 = vld [vmem:[#allocation7 + $0x290] sm:$0xff]  ;;  %v2021_v53 = vpack.c.bf16 %v617_v50, %v614_v49  ;;  %v623_v56 = vld [vmem:[#allocation7 + $0x288] sm:$0xff] }
  0x78   :  { %1992 = vmatprep.subr.bf16.mxu1 %v1991_v3  ;;  %v2023_v54 = vpack.c.bf16 %v624_v52, %v621_v51  ;;  %v620_v55 = vld [vmem:[#allocation7 + $0x270] sm:$0xff]  ;;  %v627_v57 = vld [vmem:[#allocation7 + $0x2a8] sm:$0xff]  ;;  %v630_v58 = vld [vmem:[#allocation7 + $0x2c0] sm:$0xff] }
  0x79   :  { %v2025_v59 = vpack.c.bf16 %v623_v56, %v620_v55  ;;  %v2027_v60 = vpack.c.bf16 %v630_v58, %v627_v57  ;;  %v626_v61 = vld [vmem:[#allocation7 + $0x2a0] sm:$0xff]  ;;  %v629_v62 = vld [vmem:[#allocation7 + $0x2b8] sm:$0xff]  ;;  %v636_v2 = vld [vmem:[#allocation7 + $0x2f0] sm:$0xff] }
  0x7a   :  { %v2029_v63 = vpack.c.bf16 %v629_v62, %v626_v61  ;;  %v633_v0 = vld [vmem:[#allocation7 + $0x2d8] sm:$0xff]  ;;  %v632_v4 = vld [vmem:[#allocation7 + $0x2d0] sm:$0xff]  ;;  %v635_v5 = vld [vmem:[#allocation7 + $0x2e8] sm:$0xff] }
  0x7b   :  { %1994 = vmatpush1.bf16.msra.mxu1 %v1993_v10  ;;  %v2031_v3 = vpack.c.bf16 %v636_v2, %v633_v0  ;;  %v2033_v6 = vpack.c.bf16 %v635_v5, %v632_v4  ;;  %v592_v7 = vld [vmem:[#allocation7 + $0x190] sm:$0xff]  ;;  %v800_v10 = vld [vmem:[#allocation8 + $0x8] sm:$0xff]  ;;  %v799_v13 = vld [vmem:[#allocation8] sm:$0xff] }
  0x7c   :  { %1840 = vmatmul.mubr.msk.f32.vlgmr.msra.gmra.mrb[0].mxu0 %vm124_vm0, %v376_v8  ;;  %1996 = vmatprep.subr.bf16.mxu1 %v1995_v11  ;;  %v595_v8 = vld [vmem:[#allocation7 + $0x1a8] sm:$0xff]  ;;  %v803_v14 = vld [vmem:[#allocation8 + $0x20] sm:$0xff] }
  0x7d   :  { %1970 = vmatpush1.bf16.msra.mxu0 %v1969_v9  ;;  %531 = vmatprep.mubr.f32.mxu0 %v2624_v1  ;;  %v2035_v9 = vpack.c.bf16 %v595_v8, %v592_v7  ;;  %v804_v11 = vld [vmem:[#allocation8 + $0x28] sm:$0xff]  ;;  %v2069_v15 = vpack.c.bf16 %v803_v14, %v799_v13  ;;  %v807_v19 = vld [vmem:[#allocation8 + $0x40] sm:$0xff] }
  0x7e   :  { %v2067_v12 = vpack.c.bf16 %v804_v11, %v800_v10  ;;  %v811_v20 = vld [vmem:[#allocation8 + $0x60] sm:$0xff]  ;;  %v824_v28 = vld [vmem:[#allocation8 + $0xc8] sm:$0xff] }
  0x7f   :  { %1998 = vmatpush1.bf16.msra.mxu1 %v1997_v16  ;;  %v808_v16 = vld [vmem:[#allocation8 + $0x48] sm:$0xff]  ;;  %v2073_v21 = vpack.c.bf16 %v811_v20, %v807_v19  ;;  %v815_v25 = vld [vmem:[#allocation8 + $0x80] sm:$0xff] }
  0x80   :  { %2000 = vmatprep.subr.bf16.mxu1 %v1999_v17  ;;  %2068 = vmatprep.subr.bf16.mxu0 %v2067_v12  ;;  %v812_v17 = vld [vmem:[#allocation8 + $0x68] sm:$0xff]  ;;  %v819_v26 = vld [vmem:[#allocation8 + $0xa0] sm:$0xff] }
  0x81   :  { %v2071_v18 = vpack.c.bf16 %v812_v17, %v808_v16  ;;  %v2077_v27 = vpack.c.bf16 %v819_v26, %v815_v25  ;;  %v823_v31 = vld [vmem:[#allocation8 + $0xc0] sm:$0xff]  ;;  %v832_v34 = vld [vmem:[#allocation8 + $0x108] sm:$0xff] }
  0x82   :  { %v827_v32 = vld [vmem:[#allocation8 + $0xe0] sm:$0xff]  ;;  %v840_v40 = vld [vmem:[#allocation8 + $0x148] sm:$0xff] }
  0x83   :  { %2002 = vmatpush1.bf16.msra.mxu1 %v2001_v23  ;;  %v820_v23 = vld [vmem:[#allocation8 + $0xa8] sm:$0xff]  ;;  %v2081_v33 = vpack.c.bf16 %v827_v32, %v823_v31  ;;  %v831_v37 = vld [vmem:[#allocation8 + $0x100] sm:$0xff] }
  0x84   :  { %1841 = vmatmul.mubr.msk.f32.vlgmr.msra.gmra.mrb[0].mxu0 %vm124_vm0, %v458_v22  ;;  %2004 = vmatprep.subr.bf16.mxu1 %v2003_v24  ;;  %v816_v22 = vld [vmem:[#allocation8 + $0x88] sm:$0xff]  ;;  %v835_v38 = vld [vmem:[#allocation8 + $0x120] sm:$0xff] }
  0x85   :  { %2070 = vmatpush1.bf16.msra.mxu0 %v2069_v15  ;;  %v2075_v24 = vpack.c.bf16 %v820_v23, %v816_v22  ;;  %v2085_v39 = vpack.c.bf16 %v835_v38, %v831_v37  ;;  %v839_v43 = vld [vmem:[#allocation8 + $0x140] sm:$0xff]  ;;  %v848_v46 = vld [vmem:[#allocation8 + $0x188] sm:$0xff]  ;;  %v118_v37 = vld [vmem:[#allocation5] sm:$0x3] }
  0x86   :  { %2072 = vmatprep.subr.bf16.mxu0 %v2071_v18  ;;  %v843_v44 = vld [vmem:[#allocation8 + $0x160] sm:$0xff]  ;;  %v856_v52 = vld [vmem:[#allocation8 + $0x1c8] sm:$0xff] }
  0x87   :  { %2006 = vmatpush1.bf16.msra.mxu1 %v2005_v29  ;;  %v828_v29 = vld [vmem:[#allocation8 + $0xe8] sm:$0xff]  ;;  %v2089_v45 = vpack.c.bf16 %v843_v44, %v839_v43  ;;  %v847_v49 = vld [vmem:[#allocation8 + $0x180] sm:$0xff]  ;;  %v544_v44 = vld [vmem:[#allocation7 + $0x10] sm:$0xff] }
  0x88   :  { %2008 = vmatprep.subr.bf16.mxu1 %v2007_v30  ;;  %v2079_v30 = vpack.c.bf16 %v828_v29, %v824_v28  ;;  %v851_v50 = vld [vmem:[#allocation8 + $0x1a0] sm:$0xff]  ;;  %v864_v58 = vld [vmem:[#allocation8 + $0x208] sm:$0xff] }
  0x89   :  { %2074 = vmatpush1.bf16.msra.mxu0 %v2073_v21  ;;  %v2093_v51 = vpack.c.bf16 %v851_v50, %v847_v49  ;;  %v855_v55 = vld [vmem:[#allocation8 + $0x1c0] sm:$0xff]  ;;  %v872_v0 = vld [vmem:[#allocation8 + $0x248] sm:$0xff] }
  0x8a   :  { %2076 = vmatprep.subr.bf16.mxu0 %v2075_v24  ;;  %v859_v56 = vld [vmem:[#allocation8 + $0x1e0] sm:$0xff]  ;;  %v876_v2 = vld [vmem:[#allocation8 + $0x268] sm:$0xff] }
  0x8b   :  { %2010 = vmatpush1.bf16.msra.mxu1 %v2009_v35  ;;  %v836_v35 = vld [vmem:[#allocation8 + $0x128] sm:$0xff]  ;;  %v2097_v57 = vpack.c.bf16 %v859_v56, %v855_v55  ;;  %v863_v61 = vld [vmem:[#allocation8 + $0x200] sm:$0xff]  ;;  %v604_v55 = vld [vmem:[#allocation7 + $0x1f0] sm:$0xff] }
  0x8c   :  { %2012 = vmatprep.subr.bf16.mxu1 %v2011_v36  ;;  %v2083_v36 = vpack.c.bf16 %v836_v35, %v832_v34  ;;  %v867_v62 = vld [vmem:[#allocation8 + $0x220] sm:$0xff]  ;;  %v880_v7 = vld [vmem:[#allocation8 + $0x288] sm:$0xff]  ;;  %v200_v34 = vlaneseq }
  0x8d   :  { %2078 = vmatpush1.bf16.msra.mxu0 %v2077_v27  ;;  %v871_v4 = vld [vmem:[#allocation8 + $0x240] sm:$0xff]  ;;  %v884_v8 = vld [vmem:[#allocation8 + $0x2a8] sm:$0xff] }
  0x8e   :  { %2080 = vmatprep.subr.bf16.mxu0 %v2079_v30  ;;  %v875_v5 = vld [vmem:[#allocation8 + $0x260] sm:$0xff]  ;;  %v888_v13 = vld [vmem:[#allocation8 + $0x2c8] sm:$0xff]  ;;  %v2800_v35 = vshrl.u32 %v200_v34, 7  ;;  %v810_v34 = vld [vmem:[#allocation8 + $0x58] sm:$0xff] }
  0x8f   :  { %2014 = vmatpush1.bf16.msra.mxu1 %v2013_v41  ;;  %v844_v41 = vld [vmem:[#allocation8 + $0x168] sm:$0xff]  ;;  %v879_v10 = vld [vmem:[#allocation8 + $0x280] sm:$0xff] }
  0x90   :  { %2016 = vmatprep.subr.bf16.mxu1 %v2015_v42  ;;  %v2087_v42 = vpack.c.bf16 %v844_v41, %v840_v40  ;;  %v883_v11 = vld [vmem:[#allocation8 + $0x2a0] sm:$0xff]  ;;  %v892_v14 = vld [vmem:[#allocation8 + $0x2e8] sm:$0xff]  ;;  %v2806_v38 = vsub.s32 1, %v2800_v35 }
  0x91   :  { %2082 = vmatpush1.bf16.msra.mxu0 %v2081_v33  ;;  %v2109_v12 = vpack.c.bf16 %v883_v11, %v879_v10  ;;  %v2111_v15 = vpack.c.bf16 %v892_v14, %v888_v13  ;;  %v887_v16 = vld [vmem:[#allocation8 + $0x2c0] sm:$0xff]  ;;  %v896_v19 = vld [vmem:[#allocation8 + $0x308] sm:$0xff]  ;;  %v625_v11 = vld [vmem:[#allocation7 + $0x298] sm:$0xff] }
  0x92   :  { %2084 = vmatprep.subr.bf16.mxu0 %v2083_v36  ;;  %v891_v17 = vld [vmem:[#allocation8 + $0x2e0] sm:$0xff]  ;;  %v900_v20 = vld [vmem:[#allocation8 + $0x328] sm:$0xff]  ;;  %v2803_v36 = vsub.s32 0, %v2800_v35  ;;  %v207_v40 = vrot.slane %v118_v37, %v2806_v38 }
  0x93   :  { %2018 = vmatpush1.bf16.msra.mxu1 %v2017_v47  ;;  %v852_v47 = vld [vmem:[#allocation8 + $0x1a8] sm:$0xff]  ;;  %v2113_v18 = vpack.c.bf16 %v891_v17, %v887_v16  ;;  %v2115_v21 = vpack.c.bf16 %v900_v20, %v896_v19  ;;  %v895_v22 = vld [vmem:[#allocation8 + $0x300] sm:$0xff]  ;;  %v628_v16 = vld [vmem:[#allocation7 + $0x2b0] sm:$0xff] }
  0x94   :  { %2020 = vmatprep.subr.bf16.mxu1 %v2019_v48  ;;  %v2091_v48 = vpack.c.bf16 %v852_v47, %v848_v46  ;;  %v899_v23 = vld [vmem:[#allocation8 + $0x320] sm:$0xff]  ;;  %v904_v25 = vld [vmem:[#allocation8 + $0x348] sm:$0xff]  ;;  %v580_v20 = vld [vmem:[#allocation7 + $0x130] sm:$0xff] }
  0x95   :  { %2086 = vmatpush1.bf16.msra.mxu0 %v2085_v39  ;;  %v2117_v24 = vpack.c.bf16 %v899_v23, %v895_v22  ;;  %v908_v26 = vld [vmem:[#allocation8 + $0x368] sm:$0xff]  ;;  %v903_v28 = vld [vmem:[#allocation8 + $0x340] sm:$0xff]  ;;  %v203_v39 = vrot.slane %v118_v37, %v2803_v36  ;;  %v637_v23 = vld [vmem:[#allocation7 + $0x2f8] sm:$0xff] }
  0x96   :  { %2088 = vmatprep.subr.bf16.mxu0 %v2087_v42  ;;  %v2119_v27 = vpack.c.bf16 %v908_v26, %v904_v25  ;;  %v907_v29 = vld [vmem:[#allocation8 + $0x360] sm:$0xff]  ;;  %v912_v31 = vld [vmem:[#allocation8 + $0x388] sm:$0xff]  ;;  %v814_v37 = vld [vmem:[#allocation8 + $0x78] sm:$0xff] }
  0x97   :  { %2022 = vmatpush1.bf16.msra.mxu1 %v2021_v53  ;;  %v860_v53 = vld [vmem:[#allocation8 + $0x1e8] sm:$0xff]  ;;  %v2121_v30 = vpack.c.bf16 %v907_v29, %v903_v28  ;;  %v598_v47 = vld [vmem:[#allocation7 + $0x1c0] sm:$0xff]  ;;  %v802_v28 = vld [vmem:[#allocation8 + $0x18] sm:$0xff] }
  0x98   :  { %2024 = vmatprep.subr.bf16.mxu1 %v2023_v54  ;;  %v2095_v54 = vpack.c.bf16 %v860_v53, %v856_v52  ;;  %v916_v32 = vld [vmem:[#allocation8 + $0x3a8] sm:$0xff]  ;;  %v550_v53 = vld [vmem:[#allocation7 + $0x40] sm:$0xff]  ;;  %v806_v29 = vld [vmem:[#allocation8 + $0x38] sm:$0xff] }
  0x99   :  { %2090 = vmatpush1.bf16.msra.mxu0 %v2089_v45  ;;  %v2123_v33 = vpack.c.bf16 %v916_v32, %v912_v31  ;;  %v547_v45 = vld [vmem:[#allocation7 + $0x28] sm:$0xff]  ;;  %v622_v10 = vld [vmem:[#allocation7 + $0x280] sm:$0xff]  ;;  %v2163_v31 = vpack.c.bf16 %v806_v29, %v802_v28  ;;  %v801_v32 = vld [vmem:[#allocation8 + $0x10] sm:$0xff] }
  0x9a   :  { %2092 = vmatprep.subr.bf16.mxu0 %v2091_v48  ;;  %v601_v48 = vld [vmem:[#allocation7 + $0x1d8] sm:$0xff]  ;;  %v2037_v50 = vpack.c.bf16 %v547_v45, %v544_v44  ;;  %v607_v56 = vld [vmem:[#allocation7 + $0x208] sm:$0xff]  ;;  %v2055_v13 = vpack.c.bf16 %v625_v11, %v622_v10  ;;  %v574_v14 = vld [vmem:[#allocation7 + $0x100] sm:$0xff] }
  0x9b   :  { %2026 = vmatpush1.bf16.msra.mxu1 %v2025_v59  ;;  %v868_v59 = vld [vmem:[#allocation8 + $0x228] sm:$0xff]  ;;  %v2039_v52 = vpack.c.bf16 %v601_v48, %v598_v47  ;;  %v634_v22 = vld [vmem:[#allocation7 + $0x2e0] sm:$0xff]  ;;  %v818_v44 = vld [vmem:[#allocation8 + $0x98] sm:$0xff] }
  0x9c   :  { %2028 = vmatprep.subr.bf16.mxu1 %v2027_v60  ;;  %v2099_v60 = vpack.c.bf16 %v868_v59, %v864_v58  ;;  %v2043_v58 = vpack.c.bf16 %v607_v56, %v604_v55  ;;  %v556_v59 = vld [vmem:[#allocation7 + $0x70] sm:$0xff]  ;;  %v631_v17 = vld [vmem:[#allocation7 + $0x2c8] sm:$0xff]  ;;  %v2063_v25 = vpack.c.bf16 %v637_v23, %v634_v22  ;;  %v586_v26 = vld [vmem:[#allocation7 + $0x160] sm:$0xff] }
  0x9d   :  { %2094 = vmatpush1.bf16.msra.mxu0 %v2093_v51  ;;  %v2059_v19 = vpack.c.bf16 %v631_v17, %v628_v16  ;;  %v822_v45 = vld [vmem:[#allocation8 + $0xb8] sm:$0xff]  ;;  %v817_v48 = vld [vmem:[#allocation8 + $0x90] sm:$0xff] }
  0x9e   :  { %2096 = vmatprep.subr.bf16.mxu0 %v2095_v54  ;;  %v553_v54 = vld [vmem:[#allocation7 + $0x58] sm:$0xff]  ;;  %v2171_v47 = vpack.c.bf16 %v822_v45, %v818_v44  ;;  %v825_v55 = vld [vmem:[#allocation8 + $0xd0] sm:$0xff] }
  0x9f   :  { %2030 = vmatpush1.bf16.msra.mxu1 %v2029_v63  ;;  %v2101_v63 = vpack.c.bf16 %v867_v62, %v863_v61  ;;  %v610_v61 = vld [vmem:[#allocation7 + $0x220] sm:$0xff]  ;;  %v613_v62 = vld [vmem:[#allocation7 + $0x238] sm:$0xff]  ;;  %v829_v56 = vld [vmem:[#allocation8 + $0xf0] sm:$0xff] }
  0xa0   :  { %2032 = vmatprep.subr.bf16.mxu1 %v2031_v3  ;;  %v2103_v3 = vpack.c.bf16 %v876_v2, %v872_v0  ;;  %v2047_v0 = vpack.c.bf16 %v613_v62, %v610_v61  ;;  %v562_v2 = vld [vmem:[#allocation7 + $0xa0] sm:$0xff]  ;;  %v842_v61 = vld [vmem:[#allocation8 + $0x158] sm:$0xff] }
  0xa1   :  { %2098 = vmatpush1.bf16.msra.mxu0 %v2097_v57  ;;  %v2041_v57 = vpack.c.bf16 %v553_v54, %v550_v53  ;;  %v846_v62 = vld [vmem:[#allocation8 + $0x178] sm:$0xff] }
  0xa2   :  { %2100 = vmatprep.subr.bf16.mxu0 %v2099_v60  ;;  %v559_v60 = vld [vmem:[#allocation7 + $0x88] sm:$0xff]  ;;  %v858_v10 = vld [vmem:[#allocation8 + $0x1d8] sm:$0xff] }
  0xa3   :  { %2034 = vmatpush1.bf16.msra.mxu1 %v2033_v6  ;;  %v2105_v6 = vpack.c.bf16 %v875_v5, %v871_v4  ;;  %v616_v4 = vld [vmem:[#allocation7 + $0x250] sm:$0xff]  ;;  %v619_v5 = vld [vmem:[#allocation7 + $0x268] sm:$0xff]  ;;  %v862_v11 = vld [vmem:[#allocation8 + $0x1f8] sm:$0xff] }
  0xa4   :  { %2036 = vmatprep.subr.bf16.mxu1 %v2035_v9  ;;  %v2107_v9 = vpack.c.bf16 %v884_v8, %v880_v7  ;;  %v2051_v7 = vpack.c.bf16 %v619_v5, %v616_v4  ;;  %v568_v8 = vld [vmem:[#allocation7 + $0xd0] sm:$0xff]  ;;  %v850_v4 = vld [vmem:[#allocation8 + $0x198] sm:$0xff] }
  0xa5   :  { %2102 = vmatpush1.bf16.msra.mxu0 %v2101_v63  ;;  %v2045_v63 = vpack.c.bf16 %v559_v60, %v556_v59  ;;  %v2177_v59 = vpack.c.bf16 %v829_v56, %v825_v55  ;;  %v837_v60 = vld [vmem:[#allocation8 + $0x130] sm:$0xff]  ;;  %v854_v5 = vld [vmem:[#allocation8 + $0x1b8] sm:$0xff] }
  0xa6   :  { %2104 = vmatprep.subr.bf16.mxu0 %v2103_v3  ;;  %v565_v3 = vld [vmem:[#allocation7 + $0xb8] sm:$0xff]  ;;  %v905_v55 = vld [vmem:[#allocation8 + $0x350] sm:$0xff] }
  0xa7   :  { %v866_v16 = vld [vmem:[#allocation8 + $0x218] sm:$0xff]  ;;  %v909_v56 = vld [vmem:[#allocation8 + $0x370] sm:$0xff] }
  0xa8   :  { %v870_v17 = vld [vmem:[#allocation8 + $0x238] sm:$0xff] }
  0xa9   :  { %2106 = vmatpush1.bf16.msra.mxu0 %v2105_v6  ;;  %v2049_v6 = vpack.c.bf16 %v565_v3, %v562_v2  ;;  %v841_v2 = vld [vmem:[#allocation8 + $0x150] sm:$0xff]  ;;  %v874_v22 = vld [vmem:[#allocation8 + $0x258] sm:$0xff] }
  0xaa   :  { %2108 = vmatprep.subr.bf16.mxu0 %v2107_v9  ;;  %v571_v9 = vld [vmem:[#allocation7 + $0xe8] sm:$0xff]  ;;  %v845_v3 = vld [vmem:[#allocation8 + $0x170] sm:$0xff]  ;;  %v878_v23 = vld [vmem:[#allocation8 + $0x278] sm:$0xff] }
  0xab   :  { %v882_v28 = vld [vmem:[#allocation8 + $0x298] sm:$0xff] }
  0xac   :  { %v886_v29 = vld [vmem:[#allocation8 + $0x2b8] sm:$0xff] }
  0xad   :  { %2110 = vmatpush1.bf16.msra.mxu0 %v2109_v12  ;;  %v2053_v12 = vpack.c.bf16 %v571_v9, %v568_v8  ;;  %v849_v8 = vld [vmem:[#allocation8 + $0x190] sm:$0xff]  ;;  %v898_v44 = vld [vmem:[#allocation8 + $0x318] sm:$0xff] }
  0xae   :  { %2112 = vmatprep.subr.bf16.mxu0 %v2111_v15  ;;  %v577_v15 = vld [vmem:[#allocation7 + $0x118] sm:$0xff]  ;;  %v853_v9 = vld [vmem:[#allocation8 + $0x1b0] sm:$0xff] }
  0xaf   :  { %v902_v45 = vld [vmem:[#allocation8 + $0x338] sm:$0xff] }
  0xb1   :  { %2114 = vmatpush1.bf16.msra.mxu0 %v2113_v18  ;;  %v2057_v18 = vpack.c.bf16 %v577_v15, %v574_v14  ;;  %v857_v14 = vld [vmem:[#allocation8 + $0x1d0] sm:$0xff] }
  0xb2   :  { %2116 = vmatprep.subr.bf16.mxu0 %v2115_v21  ;;  %v583_v21 = vld [vmem:[#allocation7 + $0x148] sm:$0xff]  ;;  %v861_v15 = vld [vmem:[#allocation8 + $0x1f0] sm:$0xff] }
  0xb5   :  { %2118 = vmatpush1.bf16.msra.mxu0 %v2117_v24  ;;  %v2061_v24 = vpack.c.bf16 %v583_v21, %v580_v20  ;;  %v865_v20 = vld [vmem:[#allocation8 + $0x210] sm:$0xff] }
  0xb6   :  { %2120 = vmatprep.subr.bf16.mxu0 %v2119_v27  ;;  %v589_v27 = vld [vmem:[#allocation7 + $0x178] sm:$0xff]  ;;  %v869_v21 = vld [vmem:[#allocation8 + $0x230] sm:$0xff] }
  0xb9   :  { %2122 = vmatpush1.bf16.msra.mxu0 %v2121_v30  ;;  %v2065_v30 = vpack.c.bf16 %v589_v27, %v586_v26  ;;  %v873_v26 = vld [vmem:[#allocation8 + $0x250] sm:$0xff] }
  0xba   :  { %2124 = vmatprep.subr.bf16.mxu0 %v2123_v33  ;;  %v805_v33 = vld [vmem:[#allocation8 + $0x30] sm:$0xff] }
  0xbb   :  { %v877_v27 = vld [vmem:[#allocation8 + $0x270] sm:$0xff] }
 0x157   :  { %v533_v41 = vpop.f32.mrb[0].mxu0 }
 0x158   :  { %v2810_v42 = vadd.f32 %v533_v41, %v203_v39  ;;  %v535_v43 = vpop.f32.mrb[1].mxu0  ;;  %v2165_v39 = vpack.c.bf16 %v805_v33, %v801_v32  ;;  %v809_v41 = vld [vmem:[#allocation8 + $0x50] sm:$0xff] }
 0x159   :  { %v2452_v46 = vadd.f32 %v535_v43, %v207_v40  ;;  %v2167_v40 = vpack.c.bf16 %v814_v37, %v810_v34  ;;  %v813_v43 = vld [vmem:[#allocation8 + $0x70] sm:$0xff]  ;;  %v890_v34 = vld [vmem:[#allocation8 + $0x2d8] sm:$0xff] }
 0x15a   :  { %v540_v51 = vmax.f32 %v2810_v42, 0.0  ;;  %v881_v32 = vld [vmem:[#allocation8 + $0x290] sm:$0xff]  ;;  %v894_v37 = vld [vmem:[#allocation8 + $0x2f8] sm:$0xff] }
 0x15b   :  { %v541_v49 = vmax.f32 %v2452_v46, 0.0  ;;  %v2169_v46 = vpack.c.bf16 %v813_v43, %v809_v41  ;;  %v885_v33 = vld [vmem:[#allocation8 + $0x2b0] sm:$0xff] }
 0x15c   :  { %v889_v41 = vld [vmem:[#allocation8 + $0x2d0] sm:$0xff] }
 0x15d   :  { %719 = vmatprep.mubr.f32.mxu1 %v541_v49  ;;  %v893_v43 = vld [vmem:[#allocation8 + $0x2f0] sm:$0xff] }
 0x15e   :  { %720 = vmatmul.mubr.f32.vlgmr.msra.gmra.mrb[0].mxu1 %v540_v51 }
 0x15f   :  { %2038 = vmatpush3.bf16.msra.mxu1 %v2037_v50  ;;  %790 = vmatprep.mubr.f32.mxu1 %v541_v49  ;;  %v821_v49 = vld [vmem:[#allocation8 + $0xb0] sm:$0xff]  ;;  %v826_v50 = vld [vmem:[#allocation8 + $0xd8] sm:$0xff] }
 0x160   :  { %2040 = vmatprep.subr.bf16.mxu1 %v2039_v52  ;;  %v830_v52 = vld [vmem:[#allocation8 + $0xf8] sm:$0xff]  ;;  %v2173_v53 = vpack.c.bf16 %v821_v49, %v817_v48  ;;  %v897_v48 = vld [vmem:[#allocation8 + $0x310] sm:$0xff] }
 0x161   :  { %v2175_v54 = vpack.c.bf16 %v830_v52, %v826_v50  ;;  %v901_v49 = vld [vmem:[#allocation8 + $0x330] sm:$0xff]  ;;  %v906_v50 = vld [vmem:[#allocation8 + $0x358] sm:$0xff] }
 0x162   :  { %v910_v52 = vld [vmem:[#allocation8 + $0x378] sm:$0xff] }
 0x163   :  { %2042 = vmatpush3.bf16.msra.mxu1 %v2041_v57  ;;  %v834_v57 = vld [vmem:[#allocation8 + $0x118] sm:$0xff] }
 0x164   :  { %2044 = vmatprep.subr.bf16.mxu1 %v2043_v58  ;;  %v838_v58 = vld [vmem:[#allocation8 + $0x138] sm:$0xff] }
 0x165   :  { %v2179_v42 = vpack.c.bf16 %v838_v58, %v834_v57  ;;  %v914_v57 = vld [vmem:[#allocation8 + $0x398] sm:$0xff] }
 0x166   :  { %v918_v58 = vld [vmem:[#allocation8 + $0x3b8] sm:$0xff] }
 0x167   :  { %2046 = vmatpush3.bf16.msra.mxu1 %v2045_v63 }
 0x168   :  { %2048 = vmatprep.subr.bf16.mxu1 %v2047_v0  ;;  %v2183_v0 = vpack.c.bf16 %v846_v62, %v842_v61  ;;  %v913_v62 = vld [vmem:[#allocation8 + $0x390] sm:$0xff] }
 0x16b   :  { %2050 = vmatpush3.bf16.msra.mxu1 %v2049_v6  ;;  %v2185_v6 = vpack.c.bf16 %v845_v3, %v841_v2  ;;  %v924_v2 = vld [vmem:[#allocation8 + $0x3e8] sm:$0xff]  ;;  %v922_v3 = vld [vmem:[#allocation8 + $0x3d8] sm:$0xff] }
 0x16c   :  { %2052 = vmatprep.subr.bf16.mxu1 %v2051_v7  ;;  %v2187_v7 = vpack.c.bf16 %v854_v5, %v850_v4 }
 0x16f   :  { %2054 = vmatpush3.bf16.msra.mxu1 %v2053_v12  ;;  %v2189_v12 = vpack.c.bf16 %v853_v9, %v849_v8  ;;  %v923_v8 = vld [vmem:[#allocation8 + $0x3e0] sm:$0xff] }
 0x170   :  { %2056 = vmatprep.subr.bf16.mxu1 %v2055_v13  ;;  %v2191_v13 = vpack.c.bf16 %v862_v11, %v858_v10  ;;  %v921_v11 = vld [vmem:[#allocation8 + $0x3d0] sm:$0xff] }
 0x173   :  { %2058 = vmatpush3.bf16.msra.mxu1 %v2057_v18  ;;  %v2193_v18 = vpack.c.bf16 %v861_v15, %v857_v14  ;;  %v932_v14 = vld [vmem:[#allocation8 + $0x428] sm:$0xff]  ;;  %v930_v15 = vld [vmem:[#allocation8 + $0x418] sm:$0xff] }
 0x174   :  { %2060 = vmatprep.subr.bf16.mxu1 %v2059_v19  ;;  %v2195_v19 = vpack.c.bf16 %v870_v17, %v866_v16 }
 0x177   :  { %2062 = vmatpush3.bf16.msra.mxu1 %v2061_v24  ;;  %v2197_v24 = vpack.c.bf16 %v869_v21, %v865_v20  ;;  %v2820_v20 = vld [vmem:[%s2872_s8] sm:$0x7] }
 0x178   :  { %2064 = vmatprep.subr.bf16.mxu1 %v2063_v25  ;;  %v2199_v25 = vpack.c.bf16 %v878_v23, %v874_v22  ;;  %v643_v21 = vrot.slane %v2820_v20, %v2803_v36  ;;  %v647_v22 = vrot.slane %v2820_v20, %v2806_v38 }
 0x17b   :  { %2066 = vmatpush3.bf16.msra.mxu1 %v2065_v30  ;;  %v2201_v30 = vpack.c.bf16 %v877_v27, %v873_v26 }
 0x17c   :  { %2164 = vmatprep.subr.bf16.mxu1 %v2163_v31  ;;  %v2203_v31 = vpack.c.bf16 %v886_v29, %v882_v28  ;;  %v929_v28 = vld [vmem:[#allocation8 + $0x410] sm:$0xff] }
 0x17d   :  { %v933_v29 = vld [vmem:[#allocation8 + $0x430] sm:$0xff] }
 0x17e   :  { %791 = vmatmul.mubr.f32.vlgmr.msra.gmra.mrb[2].mxu1 %v540_v51  ;;  %v833_v51 = vld [vmem:[#allocation8 + $0x110] sm:$0xff] }
 0x17f   :  { %2166 = vmatpush1.bf16.msra.mxu1 %v2165_v39  ;;  %v2181_v63 = vpack.c.bf16 %v837_v60, %v833_v51  ;;  %v2205_v39 = vpack.c.bf16 %v885_v33, %v881_v32  ;;  %v915_v51 = vld [vmem:[#allocation8 + $0x3a0] sm:$0xff]  ;;  %v2219_v60 = vpack.c.bf16 %v918_v58, %v914_v57  ;;  %v940_v32 = vld [vmem:[#allocation8 + $0x468] sm:$0xff]  ;;  %v938_v33 = vld [vmem:[#allocation8 + $0x458] sm:$0xff] }
 0x180   :  { %2168 = vmatprep.subr.bf16.mxu1 %v2167_v40  ;;  %v2207_v40 = vpack.c.bf16 %v894_v37, %v890_v34  ;;  %v942_v34 = vld [vmem:[#allocation8 + $0x478] sm:$0xff]  ;;  %v947_v57 = vld [vmem:[#allocation8 + $0x4a0] sm:$0xff] }
 0x183   :  { %2170 = vmatpush1.bf16.msra.mxu1 %v2169_v46  ;;  %v2209_v46 = vpack.c.bf16 %v893_v43, %v889_v41  ;;  %v935_v41 = vld [vmem:[#allocation8 + $0x440] sm:$0xff] }
 0x184   :  { %2172 = vmatprep.subr.bf16.mxu1 %v2171_v47  ;;  %v2211_v47 = vpack.c.bf16 %v902_v45, %v898_v44  ;;  %v939_v43 = vld [vmem:[#allocation8 + $0x460] sm:$0xff] }
 0x187   :  { %2174 = vmatpush1.bf16.msra.mxu1 %v2173_v53  ;;  %v2213_v53 = vpack.c.bf16 %v901_v49, %v897_v48  ;;  %v941_v48 = vld [vmem:[#allocation8 + $0x470] sm:$0xff]  ;;  %v944_v49 = vld [vmem:[#allocation8 + $0x488] sm:$0xff] }
 0x188   :  { %2176 = vmatprep.subr.bf16.mxu1 %v2175_v54  ;;  %v2215_v54 = vpack.c.bf16 %v910_v52, %v906_v50  ;;  %v948_v50 = vld [vmem:[#allocation8 + $0x4a8] sm:$0xff]  ;;  %v946_v52 = vld [vmem:[#allocation8 + $0x498] sm:$0xff] }
 0x189   :  { %v2139_v58 = vpack.c.bf16 %v948_v50, %v944_v49  ;;  %v984_v49 = vld [vmem:[#allocation8 + $0x5c8] sm:$0xff] }
 0x18a   :  { %v988_v50 = vld [vmem:[#allocation8 + $0x5e8] sm:$0xff] }
 0x18b   :  { %2178 = vmatpush1.bf16.msra.mxu1 %v2177_v59  ;;  %v2217_v59 = vpack.c.bf16 %v909_v56, %v905_v55  ;;  %v943_v56 = vld [vmem:[#allocation8 + $0x480] sm:$0xff] }
 0x18c   :  { %2180 = vmatprep.subr.bf16.mxu1 %v2179_v42  ;;  %v911_v42 = vld [vmem:[#allocation8 + $0x380] sm:$0xff] }
 0x18d   :  { %v2125_v61 = vpack.c.bf16 %v915_v51, %v911_v42  ;;  %v945_v42 = vld [vmem:[#allocation8 + $0x490] sm:$0xff] }
 0x18e   :  { %v949_v51 = vld [vmem:[#allocation8 + $0x4b0] sm:$0xff] }
 0x18f   :  { %2182 = vmatpush1.bf16.msra.mxu1 %v2181_v63  ;;  %v917_v63 = vld [vmem:[#allocation8 + $0x3b0] sm:$0xff]  ;;  %2126 = vmatpush1.bf16.msra.mxu0 %v2125_v61  ;;  %v956_v61 = vld [vmem:[#allocation8 + $0x4e8] sm:$0xff] }
 0x190   :  { %2184 = vmatprep.subr.bf16.mxu1 %v2183_v0  ;;  %v920_v0 = vld [vmem:[#allocation8 + $0x3c8] sm:$0xff]  ;;  %v2221_v4 = vpack.c.bf16 %v917_v63, %v913_v62  ;;  %v954_v62 = vld [vmem:[#allocation8 + $0x4d8] sm:$0xff] }
 0x191   :  { %v2127_v5 = vpack.c.bf16 %v924_v2, %v920_v0  ;;  %v958_v63 = vld [vmem:[#allocation8 + $0x4f8] sm:$0xff]  ;;  %v2141_v0 = vpack.c.bf16 %v947_v57, %v943_v56  ;;  %v2237_v2 = vpack.c.bf16 %v949_v51, %v945_v42  ;;  %v983_v57 = vld [vmem:[#allocation8 + $0x5c0] sm:$0xff]  ;;  %v985_v51 = vld [vmem:[#allocation8 + $0x5d0] sm:$0xff] }
 0x193   :  { %2186 = vmatpush1.bf16.msra.mxu1 %v2185_v6  ;;  %v926_v6 = vld [vmem:[#allocation8 + $0x3f8] sm:$0xff]  ;;  %2128 = vmatprep.subr.bf16.mxu0 %v2127_v5 }
 0x194   :  { %2188 = vmatprep.subr.bf16.mxu1 %v2187_v7  ;;  %v919_v7 = vld [vmem:[#allocation8 + $0x3c0] sm:$0xff]  ;;  %v2223_v9 = vpack.c.bf16 %v926_v6, %v922_v3  ;;  %v2239_v6 = vpack.c.bf16 %v958_v63, %v954_v62  ;;  %v1351_v63 = vld [vmem:[#allocation10 + $0x190] sm:$0xff] }
 0x195   :  { %v2129_v10 = vpack.c.bf16 %v923_v8, %v919_v7  ;;  %v951_v3 = vld [vmem:[#allocation8 + $0x4c0] sm:$0xff]  ;;  %v953_v7 = vld [vmem:[#allocation8 + $0x4d0] sm:$0xff] }
 0x196   :  { %v957_v8 = vld [vmem:[#allocation8 + $0x4f0] sm:$0xff]  ;;  %v1305_v62 = vld [vmem:[#allocation10 + $0x20] sm:$0xff] }
 0x197   :  { %2190 = vmatpush1.bf16.msra.mxu1 %v2189_v12  ;;  %v925_v12 = vld [vmem:[#allocation8 + $0x3f0] sm:$0xff]  ;;  %2130 = vmatpush1.bf16.msra.mxu0 %v2129_v10  ;;  %v964_v10 = vld [vmem:[#allocation8 + $0x528] sm:$0xff] }
 0x198   :  { %2192 = vmatprep.subr.bf16.mxu1 %v2191_v13  ;;  %v928_v13 = vld [vmem:[#allocation8 + $0x408] sm:$0xff]  ;;  %v2225_v16 = vpack.c.bf16 %v925_v12, %v921_v11  ;;  %v962_v11 = vld [vmem:[#allocation8 + $0x518] sm:$0xff] }
 0x199   :  { %v2131_v17 = vpack.c.bf16 %v932_v14, %v928_v13  ;;  %v966_v12 = vld [vmem:[#allocation8 + $0x538] sm:$0xff]  ;;  %v959_v14 = vld [vmem:[#allocation8 + $0x500] sm:$0xff] }
 0x19b   :  { %2194 = vmatpush1.bf16.msra.mxu1 %v2193_v18  ;;  %v934_v18 = vld [vmem:[#allocation8 + $0x438] sm:$0xff]  ;;  %2132 = vmatprep.subr.bf16.mxu0 %v2131_v17  ;;  %v2243_v17 = vpack.c.bf16 %v966_v12, %v962_v11 }
 0x19c   :  { %2196 = vmatprep.subr.bf16.mxu1 %v2195_v19  ;;  %v2227_v19 = vpack.c.bf16 %v934_v18, %v930_v15  ;;  %v963_v15 = vld [vmem:[#allocation8 + $0x520] sm:$0xff]  ;;  %v961_v18 = vld [vmem:[#allocation8 + $0x510] sm:$0xff]  ;;  %v1308_v12 = vld [vmem:[#allocation10 + $0x38] sm:$0xff] }
 0x19f   :  { %2198 = vmatpush1.bf16.msra.mxu1 %v2197_v24  ;;  %v927_v24 = vld [vmem:[#allocation8 + $0x400] sm:$0xff] }
 0x1a0   :  { %2200 = vmatprep.subr.bf16.mxu1 %v2199_v25  ;;  %v931_v25 = vld [vmem:[#allocation8 + $0x420] sm:$0xff] }
 0x1a3   :  { %2202 = vmatpush1.bf16.msra.mxu1 %v2201_v30  ;;  %v936_v30 = vld [vmem:[#allocation8 + $0x448] sm:$0xff] }
 0x1a4   :  { %2204 = vmatprep.subr.bf16.mxu1 %v2203_v31  ;;  %v2135_v45 = vpack.c.bf16 %v940_v32, %v936_v30  ;;  %v973_v32 = vld [vmem:[#allocation8 + $0x570] sm:$0xff] }
 0x1a7   :  { %2206 = vmatpush1.bf16.msra.mxu1 %v2205_v39  ;;  %v2133_v39 = vpack.c.bf16 %v931_v25, %v927_v24  ;;  %v974_v24 = vld [vmem:[#allocation8 + $0x578] sm:$0xff]  ;;  %v2149_v25 = vpack.c.bf16 %v963_v15, %v959_v14  ;;  %v1311_v14 = vld [vmem:[#allocation10 + $0x50] sm:$0xff]  ;;  %v1357_v15 = vld [vmem:[#allocation10 + $0x1c0] sm:$0xff] }
 0x1a8   :  { %2208 = vmatprep.subr.bf16.mxu1 %v2207_v40  ;;  %v2229_v40 = vpack.c.bf16 %v933_v29, %v929_v28  ;;  %v971_v28 = vld [vmem:[#allocation8 + $0x560] sm:$0xff] }
 0x1ab   :  { %2210 = vmatpush1.bf16.msra.mxu1 %v2209_v46  ;;  %v2231_v46 = vpack.c.bf16 %v942_v34, %v938_v33  ;;  %v976_v33 = vld [vmem:[#allocation8 + $0x588] sm:$0xff] }
 0x1ac   :  { %2212 = vmatprep.subr.bf16.mxu1 %v2211_v47  ;;  %v937_v47 = vld [vmem:[#allocation8 + $0x450] sm:$0xff]  ;;  %v980_v34 = vld [vmem:[#allocation8 + $0x5a8] sm:$0xff] }
 0x1ad   :  { %v2233_v55 = vpack.c.bf16 %v941_v48, %v937_v47  ;;  %v977_v47 = vld [vmem:[#allocation8 + $0x590] sm:$0xff] }
 0x1ae   :  { %v981_v48 = vld [vmem:[#allocation8 + $0x5b0] sm:$0xff] }
 0x1af   :  { %2214 = vmatpush1.bf16.msra.mxu1 %v2213_v53  ;;  %v950_v53 = vld [vmem:[#allocation8 + $0x4b8] sm:$0xff]  ;;  %v2253_v56 = vpack.c.bf16 %v981_v48, %v977_v47  ;;  %v1319_v48 = vld [vmem:[#allocation10 + $0x90] sm:$0xff] }
 0x1b0   :  { %2216 = vmatprep.subr.bf16.mxu1 %v2215_v54  ;;  %v2137_v54 = vpack.c.bf16 %v939_v43, %v935_v41  ;;  %v975_v43 = vld [vmem:[#allocation8 + $0x580] sm:$0xff] }
 0x1b3   :  { %2218 = vmatpush1.bf16.msra.mxu1 %v2217_v59  ;;  %v2235_v59 = vpack.c.bf16 %v950_v53, %v946_v52  ;;  %v986_v52 = vld [vmem:[#allocation8 + $0x5d8] sm:$0xff] }
 0x1b4   :  { %2220 = vmatprep.subr.bf16.mxu1 %v2219_v60  ;;  %v952_v60 = vld [vmem:[#allocation8 + $0x4c8] sm:$0xff]  ;;  %v990_v53 = vld [vmem:[#allocation8 + $0x5f8] sm:$0xff] }
 0x1b5   :  { %v2143_v5 = vpack.c.bf16 %v956_v61, %v952_v60  ;;  %v2255_v42 = vpack.c.bf16 %v990_v53, %v986_v52  ;;  %v989_v60 = vld [vmem:[#allocation8 + $0x5f0] sm:$0xff]  ;;  %v1302_v61 = vld [vmem:[#allocation10 + $0x8] sm:$0xff] }
 0x1b6   :  { %v1326_v53 = vld [vmem:[#allocation10 + $0xc8] sm:$0xff] }
 0x1b7   :  { %2222 = vmatpush1.bf16.msra.mxu1 %v2221_v4  ;;  %v955_v4 = vld [vmem:[#allocation8 + $0x4e0] sm:$0xff] }
 0x1b8   :  { %2224 = vmatprep.subr.bf16.mxu1 %v2223_v9  ;;  %v960_v9 = vld [vmem:[#allocation8 + $0x508] sm:$0xff]  ;;  %v2145_v13 = vpack.c.bf16 %v955_v4, %v951_v3 }
 0x1bb   :  { %2226 = vmatpush1.bf16.msra.mxu1 %v2225_v16  ;;  %v2147_v16 = vpack.c.bf16 %v964_v10, %v960_v9  ;;  %v1304_v9 = vld [vmem:[#allocation10 + $0x18] sm:$0xff] }
 0x1bc   :  { %2228 = vmatprep.subr.bf16.mxu1 %v2227_v19  ;;  %v965_v19 = vld [vmem:[#allocation8 + $0x530] sm:$0xff] }
 0x231   :  { %v721_v23 = vpop.f32.mrb[0].mxu1 }
 0x232   :  { %v722_v26 = vadd.f32 %v721_v23, %v643_v21  ;;  %v723_v27 = vpop.f32.mrb[1].mxu1  ;;  %v968_v21 = vld [vmem:[#allocation8 + $0x548] sm:$0xff]  ;;  %v970_v23 = vld [vmem:[#allocation8 + $0x558] sm:$0xff] }
 0x233   :  { %v724_v31 = vadd.f32 %v723_v27, %v647_v22  ;;  %v972_v22 = vld [vmem:[#allocation8 + $0x568] sm:$0xff]  ;;  %v967_v27 = vld [vmem:[#allocation8 + $0x540] sm:$0xff]  ;;  %v2247_v30 = vpack.c.bf16 %v974_v24, %v970_v23  ;;  %v2263_v23 = vpack.c.bf16 %v1311_v14, %v1308_v12 }
 0x234   :  { %v796_v44 = vmax.f32 %v722_v26, 0.0  ;;  %v2245_v26 = vpack.c.bf16 %v965_v19, %v961_v18  ;;  %v2151_v29 = vpack.c.bf16 %v972_v22, %v968_v21  ;;  %v1307_v18 = vld [vmem:[#allocation10 + $0x30] sm:$0xff]  ;;  %v1310_v19 = vld [vmem:[#allocation10 + $0x48] sm:$0xff]  ;;  %v1333_v14 = vld [vmem:[#allocation10 + $0x100] sm:$0xff] }
 0x235   :  { %v797_v37 = vmax.f32 %v724_v31, 0.0  ;;  %v969_v31 = vld [vmem:[#allocation8 + $0x550] sm:$0xff]  ;;  %v1314_v24 = vld [vmem:[#allocation10 + $0x68] sm:$0xff] }
 0x236   :  { %v2249_v41 = vpack.c.bf16 %v973_v32, %v969_v31  ;;  %v2265_v31 = vpack.c.bf16 %v1310_v19, %v1307_v18  ;;  %v1313_v32 = vld [vmem:[#allocation10 + $0x60] sm:$0xff] }
 0x237   :  { %1077 = vmatprep.mubr.f32.mxu0 %v797_v37  ;;  %1219 = vmatprep.mubr.f32.mxu1 %v797_v37  ;;  %v978_v37 = vld [vmem:[#allocation8 + $0x598] sm:$0xff]  ;;  %v1337_v19 = vld [vmem:[#allocation10 + $0x120] sm:$0xff] }
 0x238   :  { %1078 = vmatmul.mubr.f32.vlgmr.msra.gmra.mrb[2].mxu0 %v796_v44  ;;  %1220 = vmatmul.mubr.f32.vlgmr.msra.gmra.mrb[4].mxu1 %v796_v44  ;;  %v979_v44 = vld [vmem:[#allocation8 + $0x5a0] sm:$0xff] }
 0x239   :  { %2134 = vmatpush1.bf16.msra.mxu0 %v2133_v39  ;;  %2230 = vmatpush1.bf16.msra.mxu1 %v2229_v40  ;;  %v982_v39 = vld [vmem:[#allocation8 + $0x5b8] sm:$0xff]  ;;  %v2153_v40 = vpack.c.bf16 %v971_v28, %v967_v27  ;;  %v1317_v28 = vld [vmem:[#allocation10 + $0x80] sm:$0xff] }
 0x23a   :  { %2136 = vmatprep.subr.bf16.mxu0 %v2135_v45  ;;  %2232 = vmatprep.subr.bf16.mxu1 %v2231_v46  ;;  %v2155_v45 = vpack.c.bf16 %v980_v34, %v976_v33  ;;  %v2251_v46 = vpack.c.bf16 %v982_v39, %v978_v37  ;;  %v1312_v27 = vld [vmem:[#allocation10 + $0x58] sm:$0xff]  ;;  %v2267_v37 = vpack.c.bf16 %v1317_v28, %v1314_v24  ;;  %v1347_v28 = vld [vmem:[#allocation10 + $0x170] sm:$0xff] }
 0x23b   :  { %1148 = vmatprep.mubr.f32.mxu0 %v2624_v1  ;;  %1290 = vmatprep.mubr.f32.mxu1 %v2624_v1  ;;  %v2241_v1 = vpack.c.bf16 %v957_v8, %v953_v7  ;;  %v2259_v7 = vpack.c.bf16 %v1305_v62, %v1302_v61  ;;  %v1301_v8 = vld [vmem:[#allocation10] sm:$0xff]  ;;  %v1316_v33 = vld [vmem:[#allocation10 + $0x78] sm:$0xff] }
 0x23c   :  { %v1320_v39 = vld [vmem:[#allocation10 + $0x98] sm:$0xff]  ;;  %v2269_v47 = vpack.c.bf16 %v1316_v33, %v1313_v32  ;;  %v1343_v32 = vld [vmem:[#allocation10 + $0x150] sm:$0xff]  ;;  %v1346_v33 = vld [vmem:[#allocation10 + $0x168] sm:$0xff] }
 0x23d   :  { %2138 = vmatpush1.bf16.msra.mxu0 %v2137_v54  ;;  %2234 = vmatpush1.bf16.msra.mxu1 %v2233_v55  ;;  %v2829_v54 = vsub.s32 2, %v2800_v35  ;;  %v2157_v55 = vpack.c.bf16 %v979_v44, %v975_v43  ;;  %v1318_v43 = vld [vmem:[#allocation10 + $0x88] sm:$0xff]  ;;  %v1323_v44 = vld [vmem:[#allocation10 + $0xb0] sm:$0xff]  ;;  %v1328_v61 = vld [vmem:[#allocation10 + $0xd8] sm:$0xff] }
 0x23e   :  { %2140 = vmatprep.subr.bf16.mxu0 %v2139_v58  ;;  %2236 = vmatprep.subr.bf16.mxu1 %v2235_v59  ;;  %v987_v58 = vld [vmem:[#allocation8 + $0x5e0] sm:$0xff]  ;;  %v2159_v59 = vpack.c.bf16 %v988_v50, %v984_v49  ;;  %v1322_v49 = vld [vmem:[#allocation10 + $0xa8] sm:$0xff]  ;;  %v2271_v52 = vpack.c.bf16 %v1323_v44, %v1320_v39  ;;  %v2289_v39 = vpack.c.bf16 %v1346_v33, %v1343_v32  ;;  %v1356_v44 = vld [vmem:[#allocation10 + $0x1b8] sm:$0xff] }
 0x23f   :  { %v651_v3 = vrot.slane %v2820_v20, %v2829_v54  ;;  %v2161_v4 = vpack.c.bf16 %v987_v58, %v983_v57  ;;  %v2261_v20 = vpack.c.bf16 %v1304_v9, %v1301_v8  ;;  %v1324_v57 = vld [vmem:[#allocation10 + $0xb8] sm:$0xff]  ;;  %v1329_v58 = vld [vmem:[#allocation10 + $0xe0] sm:$0xff]  ;;  %v1331_v9 = vld [vmem:[#allocation10 + $0xf0] sm:$0xff] }
 0x240   :  { %v1450_v33 = vld [vmem:[#allocation10 + $0x4a8] sm:$0xff] }
 0x241   :  { %2142 = vmatpush1.bf16.msra.mxu0 %v2141_v0  ;;  %2238 = vmatpush1.bf16.msra.mxu1 %v2237_v2  ;;  %v1354_v0 = vld [vmem:[#allocation10 + $0x1a8] sm:$0xff] }
 0x242   :  { %2144 = vmatprep.subr.bf16.mxu0 %v2143_v5  ;;  %2240 = vmatprep.subr.bf16.mxu1 %v2239_v6  ;;  %v2257_v5 = vpack.c.bf16 %v989_v60, %v985_v51  ;;  %v2387_v10 = vpack.c.bf16 %v1354_v0, %v1351_v63  ;;  %v2273_v51 = vpack.c.bf16 %v1322_v49, %v1319_v48  ;;  %v1325_v60 = vld [vmem:[#allocation10 + $0xc0] sm:$0xff]  ;;  %v1332_v0 = vld [vmem:[#allocation10 + $0xf8] sm:$0xff]  ;;  %v1355_v48 = vld [vmem:[#allocation10 + $0x1b0] sm:$0xff] }
 0x243   :  { %v2275_v63 = vpack.c.bf16 %v1329_v58, %v1326_v53  ;;  %v2277_v8 = vpack.c.bf16 %v1328_v61, %v1325_v60  ;;  %v1358_v49 = vld [vmem:[#allocation10 + $0x1c8] sm:$0xff]  ;;  %v1368_v58 = vld [vmem:[#allocation10 + $0x218] sm:$0xff]  ;;  %v1367_v60 = vld [vmem:[#allocation10 + $0x210] sm:$0xff] }
 0x244   :  { %v2297_v53 = vpack.c.bf16 %v1358_v49, %v1355_v48  ;;  %v1370_v61 = vld [vmem:[#allocation10 + $0x228] sm:$0xff] }
 0x245   :  { %2146 = vmatpush1.bf16.msra.mxu0 %v2145_v13  ;;  %2242 = vmatpush1.bf16.msra.mxu1 %v2241_v1  ;;  %v1303_v13 = vld [vmem:[#allocation10 + $0x10] sm:$0xff]  ;;  %v1306_v1 = vld [vmem:[#allocation10 + $0x28] sm:$0xff] }
 0x246   :  { %2148 = vmatprep.subr.bf16.mxu0 %v2147_v16  ;;  %2244 = vmatprep.subr.bf16.mxu1 %v2243_v17  ;;  %v1360_v16 = vld [vmem:[#allocation10 + $0x1d8] sm:$0xff]  ;;  %v2389_v21 = vpack.c.bf16 %v1306_v1, %v1303_v13  ;;  %v1338_v13 = vld [vmem:[#allocation10 + $0x128] sm:$0xff] }
 0x249   :  { %2150 = vmatpush1.bf16.msra.mxu0 %v2149_v25  ;;  %2246 = vmatpush1.bf16.msra.mxu1 %v2245_v26  ;;  %v2391_v25 = vpack.c.bf16 %v1360_v16, %v1357_v15  ;;  %v1309_v26 = vld [vmem:[#allocation10 + $0x40] sm:$0xff]  ;;  %v1336_v15 = vld [vmem:[#allocation10 + $0x118] sm:$0xff] }
 0x24a   :  { %2152 = vmatprep.subr.bf16.mxu0 %v2151_v29  ;;  %2248 = vmatprep.subr.bf16.mxu1 %v2247_v30  ;;  %v1363_v29 = vld [vmem:[#allocation10 + $0x1f0] sm:$0xff]  ;;  %v1366_v30 = vld [vmem:[#allocation10 + $0x208] sm:$0xff]  ;;  %v2393_v34 = vpack.c.bf16 %v1312_v27, %v1309_v26  ;;  %v1341_v16 = vld [vmem:[#allocation10 + $0x140] sm:$0xff] }
 0x24b   :  { %v1342_v26 = vld [vmem:[#allocation10 + $0x148] sm:$0xff]  ;;  %v1344_v27 = vld [vmem:[#allocation10 + $0x158] sm:$0xff] }
 0x24d   :  { %2154 = vmatpush1.bf16.msra.mxu0 %v2153_v40  ;;  %2250 = vmatpush1.bf16.msra.mxu1 %v2249_v41  ;;  %v2395_v40 = vpack.c.bf16 %v1366_v30, %v1363_v29  ;;  %v1315_v41 = vld [vmem:[#allocation10 + $0x70] sm:$0xff] }
 0x24e   :  { %2156 = vmatprep.subr.bf16.mxu0 %v2155_v45  ;;  %2252 = vmatprep.subr.bf16.mxu1 %v2251_v46  ;;  %v1369_v45 = vld [vmem:[#allocation10 + $0x220] sm:$0xff]  ;;  %v1372_v46 = vld [vmem:[#allocation10 + $0x238] sm:$0xff]  ;;  %v2397_v50 = vpack.c.bf16 %v1318_v43, %v1315_v41 }
 0x24f   :  { %v1349_v41 = vld [vmem:[#allocation10 + $0x180] sm:$0xff]  ;;  %v1352_v43 = vld [vmem:[#allocation10 + $0x198] sm:$0xff] }
 0x251   :  { %v1878_v2 = vpop.f32.mrb[2].mxu1  ;;  %2158 = vmatpush1.bf16.msra.mxu0 %v2157_v55  ;;  %2254 = vmatpush1.bf16.msra.mxu1 %v2253_v56  ;;  %v2399_v55 = vpack.c.bf16 %v1372_v46, %v1369_v45  ;;  %v1321_v56 = vld [vmem:[#allocation10 + $0xa0] sm:$0xff]  ;;  %v1359_v45 = vld [vmem:[#allocation10 + $0x1d0] sm:$0xff]  ;;  %v2293_v46 = vpack.c.bf16 %v1352_v43, %v1349_v41 }
 0x252   :  { %v1879_v6 = vpop.f32.mrb[3].mxu1  ;;  %2160 = vmatprep.subr.bf16.mxu0 %v2159_v59  ;;  %2256 = vmatprep.subr.bf16.mxu1 %v2255_v42  ;;  %v1375_v59 = vld [vmem:[#allocation10 + $0x250] sm:$0xff]  ;;  %v1378_v42 = vld [vmem:[#allocation10 + $0x268] sm:$0xff]  ;;  %v2401_v62 = vpack.c.bf16 %v1324_v57, %v1321_v56  ;;  %v1361_v56 = vld [vmem:[#allocation10 + $0x1e0] sm:$0xff] }
 0x253   :  { %v1880_v11 = vadd.f32 %v1879_v6, %v1878_v2  ;;  %v2403_v2 = vpack.c.bf16 %v1378_v42, %v1375_v59  ;;  %v1381_v6 = vld [vmem:[#allocation10 + $0x280] sm:$0xff]  ;;  %v1364_v57 = vld [vmem:[#allocation10 + $0x1f8] sm:$0xff]  ;;  %v1371_v59 = vld [vmem:[#allocation10 + $0x230] sm:$0xff] }
 0x254   :  { %v2301_v42 = vpack.c.bf16 %v1364_v57, %v1361_v56  ;;  %v1407_v57 = vld [vmem:[#allocation10 + $0x350] sm:$0xff] }
 0x255   :  { %v793_v17 = vadd.f32 %v1880_v11, %v651_v3  ;;  %2162 = vmatpush1.bf16.msra.mxu0 %v2161_v4  ;;  %2258 = vmatpush1.bf16.msra.mxu1 %v2257_v5  ;;  %v1327_v3 = vld [vmem:[#allocation10 + $0xd0] sm:$0xff]  ;;  %v1330_v4 = vld [vmem:[#allocation10 + $0xe8] sm:$0xff] }
 0x256   :  { %2260 = vmatprep.subr.bf16.mxu0 %v2259_v7  ;;  %2388 = vmatprep.subr.bf16.mxu1 %v2387_v10  ;;  %v1335_v5 = vld [vmem:[#allocation10 + $0x110] sm:$0xff]  ;;  %v1384_v7 = vld [vmem:[#allocation10 + $0x298] sm:$0xff]  ;;  %v1334_v10 = vld [vmem:[#allocation10 + $0x108] sm:$0xff]  ;;  %v2405_v11 = vpack.c.bf16 %v1330_v4, %v1327_v3 }
 0x257   :  { %v798_v22 = vmax.f32 %v793_v17, 0.0  ;;  %v2279_v12 = vpack.c.bf16 %v1335_v5, %v1332_v0  ;;  %v2407_v1 = vpack.c.bf16 %v1384_v7, %v1381_v6  ;;  %v1387_v17 = vld [vmem:[#allocation10 + $0x2b0] sm:$0xff]  ;;  %v2281_v18 = vpack.c.bf16 %v1334_v10, %v1331_v9  ;;  %v1373_v3 = vld [vmem:[#allocation10 + $0x240] sm:$0xff]  ;;  %v1376_v4 = vld [vmem:[#allocation10 + $0x258] sm:$0xff] }
 0x258   :  { %v2305_v0 = vpack.c.bf16 %v1370_v61, %v1367_v60  ;;  %v1380_v5 = vld [vmem:[#allocation10 + $0x278] sm:$0xff]  ;;  %v1383_v6 = vld [vmem:[#allocation10 + $0x290] sm:$0xff]  ;;  %v2309_v7 = vpack.c.bf16 %v1376_v4, %v1373_v3  ;;  %v1382_v10 = vld [vmem:[#allocation10 + $0x288] sm:$0xff] }
 0x259   :  { %1149 = vmatmul.mubr.f32.vlgmr.msra.gmra.mrb[2].mxu0 %v798_v22  ;;  %1291 = vmatmul.mubr.f32.vlgmr.msra.gmra.mrb[4].mxu1 %v798_v22  ;;  %v2283_v22 = vpack.c.bf16 %v1341_v16, %v1338_v13  ;;  %v1379_v9 = vld [vmem:[#allocation10 + $0x270] sm:$0xff]  ;;  %v1410_v3 = vld [vmem:[#allocation10 + $0x368] sm:$0xff] }
 0x25a   :  { %2262 = vmatpush1.bf16.msra.mxu0 %v2261_v20  ;;  %2390 = vmatpush3.bf16.msra.mxu1 %v2389_v21  ;;  %v1390_v20 = vld [vmem:[#allocation10 + $0x2c8] sm:$0xff]  ;;  %v2409_v21 = vpack.c.bf16 %v1336_v15, %v1333_v14  ;;  %v2313_v13 = vpack.c.bf16 %v1382_v10, %v1379_v9  ;;  %v1385_v14 = vld [vmem:[#allocation10 + $0x2a0] sm:$0xff]  ;;  %v1388_v15 = vld [vmem:[#allocation10 + $0x2b8] sm:$0xff] }
 0x25b   :  { %2264 = vmatprep.subr.bf16.mxu0 %v2263_v23  ;;  %2392 = vmatprep.subr.bf16.mxu1 %v2391_v25  ;;  %v1340_v23 = vld [vmem:[#allocation10 + $0x138] sm:$0xff]  ;;  %v2411_v24 = vpack.c.bf16 %v1390_v20, %v1387_v17  ;;  %v1339_v25 = vld [vmem:[#allocation10 + $0x130] sm:$0xff]  ;;  %v2317_v16 = vpack.c.bf16 %v1388_v15, %v1385_v14 }
 0x25c   :  { %v2285_v29 = vpack.c.bf16 %v1340_v23, %v1337_v19  ;;  %v2413_v30 = vpack.c.bf16 %v1342_v26, %v1339_v25  ;;  %v1392_v17 = vld [vmem:[#allocation10 + $0x2d8] sm:$0xff]  ;;  %v1395_v20 = vld [vmem:[#allocation10 + $0x2f0] sm:$0xff]  ;;  %v1394_v23 = vld [vmem:[#allocation10 + $0x2e8] sm:$0xff] }
 0x25d   :  { %v2319_v19 = vpack.c.bf16 %v1395_v20, %v1392_v17  ;;  %v1345_v26 = vld [vmem:[#allocation10 + $0x160] sm:$0xff]  ;;  %v1403_v61 = vld [vmem:[#allocation10 + $0x330] sm:$0xff]  ;;  %v1416_v17 = vld [vmem:[#allocation10 + $0x398] sm:$0xff] }
 0x25e   :  { %2266 = vmatpush1.bf16.msra.mxu0 %v2265_v31  ;;  %2394 = vmatpush3.bf16.msra.mxu1 %v2393_v34  ;;  %v2287_v31 = vpack.c.bf16 %v1347_v28, %v1344_v27  ;;  %v1350_v34 = vld [vmem:[#allocation10 + $0x188] sm:$0xff]  ;;  %v1348_v27 = vld [vmem:[#allocation10 + $0x178] sm:$0xff]  ;;  %v1411_v15 = vld [vmem:[#allocation10 + $0x370] sm:$0xff] }
 0x25f   :  { %2268 = vmatprep.subr.bf16.mxu0 %v2267_v37  ;;  %2396 = vmatprep.subr.bf16.mxu1 %v2395_v40  ;;  %v1353_v37 = vld [vmem:[#allocation10 + $0x1a0] sm:$0xff]  ;;  %v2417_v28 = vpack.c.bf16 %v1348_v27, %v1345_v26  ;;  %v1419_v20 = vld [vmem:[#allocation10 + $0x3b0] sm:$0xff] }
 0x260   :  { %v2291_v40 = vpack.c.bf16 %v1353_v37, %v1350_v34  ;;  %v2836_v37 = vld [vmem:[%s2874_s10] sm:$0xf] }
 0x261   :  { %v1000_v41 = vrot.slane %v2836_v37, %v2806_v38  ;;  %v1417_v27 = vld [vmem:[#allocation10 + $0x3a0] sm:$0xff] }
 0x262   :  { %2270 = vmatpush1.bf16.msra.mxu0 %v2269_v47  ;;  %2398 = vmatpush3.bf16.msra.mxu1 %v2397_v50  ;;  %v2295_v47 = vpack.c.bf16 %v1359_v45, %v1356_v44  ;;  %v1362_v50 = vld [vmem:[#allocation10 + $0x1e8] sm:$0xff] }
 0x263   :  { %2272 = vmatprep.subr.bf16.mxu0 %v2271_v52  ;;  %2400 = vmatprep.subr.bf16.mxu1 %v2399_v55  ;;  %v1365_v52 = vld [vmem:[#allocation10 + $0x200] sm:$0xff] }
 0x264   :  { %v2299_v55 = vpack.c.bf16 %v1365_v52, %v1362_v50  ;;  %v1400_v50 = vld [vmem:[#allocation10 + $0x318] sm:$0xff]  ;;  %v1399_v52 = vld [vmem:[#allocation10 + $0x310] sm:$0xff] }
 0x266   :  { %2274 = vmatpush1.bf16.msra.mxu0 %v2273_v51  ;;  %2402 = vmatpush3.bf16.msra.mxu1 %v2401_v62  ;;  %v2303_v51 = vpack.c.bf16 %v1371_v59, %v1368_v58  ;;  %v1374_v62 = vld [vmem:[#allocation10 + $0x248] sm:$0xff]  ;;  %v1453_v58 = vld [vmem:[#allocation10 + $0x4c0] sm:$0xff]  ;;  %v1456_v59 = vld [vmem:[#allocation10 + $0x4d8] sm:$0xff] }
 0x267   :  { %2276 = vmatprep.subr.bf16.mxu0 %v2275_v63  ;;  %2404 = vmatprep.subr.bf16.mxu1 %v2403_v2  ;;  %v1377_v63 = vld [vmem:[#allocation10 + $0x260] sm:$0xff] }
 0x268   :  { %v2307_v2 = vpack.c.bf16 %v1377_v63, %v1374_v62  ;;  %v1406_v62 = vld [vmem:[#allocation10 + $0x348] sm:$0xff] }
 0x269   :  { %v2329_v10 = vpack.c.bf16 %v1406_v62, %v1403_v61  ;;  %v1486_v61 = vld [vmem:[#allocation10 + $0x5c8] sm:$0xff] }
 0x26a   :  { %2278 = vmatpush1.bf16.msra.mxu0 %v2277_v8  ;;  %2406 = vmatpush3.bf16.msra.mxu1 %v2405_v11  ;;  %v2311_v8 = vpack.c.bf16 %v1383_v6, %v1380_v5  ;;  %v1386_v11 = vld [vmem:[#allocation10 + $0x2a8] sm:$0xff]  ;;  %v2423_v5 = vpack.c.bf16 %v1456_v59, %v1453_v58  ;;  %v1413_v6 = vld [vmem:[#allocation10 + $0x380] sm:$0xff]  ;;  %v1432_v59 = vld [vmem:[#allocation10 + $0x418] sm:$0xff] }
 0x26b   :  { %2280 = vmatprep.subr.bf16.mxu0 %v2279_v12  ;;  %2408 = vmatprep.subr.bf16.mxu1 %v2407_v1  ;;  %v1389_v12 = vld [vmem:[#allocation10 + $0x2c0] sm:$0xff] }
 0x26c   :  { %v2315_v1 = vpack.c.bf16 %v1389_v12, %v1386_v11  ;;  %v1409_v12 = vld [vmem:[#allocation10 + $0x360] sm:$0xff] }
 0x26d   :  { %v1429_v58 = vld [vmem:[#allocation10 + $0x400] sm:$0xff] }
 0x26e   :  { %2282 = vmatpush1.bf16.msra.mxu0 %v2281_v18  ;;  %2410 = vmatpush3.bf16.msra.mxu1 %v2409_v21  ;;  %v1393_v18 = vld [vmem:[#allocation10 + $0x2e0] sm:$0xff]  ;;  %v1396_v21 = vld [vmem:[#allocation10 + $0x2f8] sm:$0xff] }
 0x26f   :  { %2284 = vmatprep.subr.bf16.mxu0 %v2283_v22  ;;  %2412 = vmatprep.subr.bf16.mxu1 %v2411_v24  ;;  %v1391_v22 = vld [vmem:[#allocation10 + $0x2d0] sm:$0xff]  ;;  %v2415_v24 = vpack.c.bf16 %v1396_v21, %v1393_v18  ;;  %v1465_v18 = vld [vmem:[#allocation10 + $0x520] sm:$0xff] }
 0x270   :  { %v2321_v25 = vpack.c.bf16 %v1394_v23, %v1391_v22  ;;  %v1415_v23 = vld [vmem:[#allocation10 + $0x390] sm:$0xff] }
 0x272   :  { %2286 = vmatpush1.bf16.msra.mxu0 %v2285_v29  ;;  %2414 = vmatpush3.bf16.msra.mxu1 %v2413_v30  ;;  %v1398_v29 = vld [vmem:[#allocation10 + $0x308] sm:$0xff]  ;;  %v1401_v30 = vld [vmem:[#allocation10 + $0x320] sm:$0xff] }
 0x273   :  { %2288 = vmatprep.subr.bf16.mxu0 %v2287_v31  ;;  %2416 = vmatprep.subr.bf16.mxu1 %v2415_v24  ;;  %v1447_v31 = vld [vmem:[#allocation10 + $0x490] sm:$0xff]  ;;  %v2323_v32 = vpack.c.bf16 %v1401_v30, %v1398_v29  ;;  %v1418_v24 = vld [vmem:[#allocation10 + $0x3a8] sm:$0xff]  ;;  %v1425_v30 = vld [vmem:[#allocation10 + $0x3e0] sm:$0xff] }
 0x274   :  { %v2419_v34 = vpack.c.bf16 %v1450_v33, %v1447_v31  ;;  %v1422_v29 = vld [vmem:[#allocation10 + $0x3c8] sm:$0xff]  ;;  %v1471_v31 = vld [vmem:[#allocation10 + $0x550] sm:$0xff]  ;;  %v2337_v33 = vpack.c.bf16 %v1418_v24, %v1415_v23 }
 0x276   :  { %2290 = vmatpush1.bf16.msra.mxu0 %v2289_v39  ;;  %2418 = vmatpush3.bf16.msra.mxu1 %v2417_v28  ;;  %v1007_v39 = vsub.s32 3, %v2800_v35  ;;  %v1404_v35 = vld [vmem:[#allocation10 + $0x338] sm:$0xff] }
 0x277   :  { %2292 = vmatprep.subr.bf16.mxu0 %v2291_v40  ;;  %2420 = vmatprep.subr.bf16.mxu1 %v2419_v34  ;;  %v996_v40 = vrot.slane %v2836_v37, %v2803_v36  ;;  %v2327_v4 = vpack.c.bf16 %v1407_v57, %v1404_v35  ;;  %v1420_v28 = vld [vmem:[#allocation10 + $0x3b8] sm:$0xff]  ;;  %v1430_v35 = vld [vmem:[#allocation10 + $0x408] sm:$0xff] }
 0x278   :  { %v1008_v43 = vrot.slane %v2836_v37, %v1007_v39  ;;  %v2433_v34 = vpack.c.bf16 %v1420_v28, %v1417_v27  ;;  %v1421_v39 = vld [vmem:[#allocation10 + $0x3c0] sm:$0xff]  ;;  %v1455_v27 = vld [vmem:[#allocation10 + $0x4d0] sm:$0xff] }
 0x27a   :  { %2294 = vmatpush1.bf16.msra.mxu0 %v2293_v46  ;;  %v1397_v46 = vld [vmem:[#allocation10 + $0x300] sm:$0xff] }
 0x27b   :  { %2296 = vmatprep.subr.bf16.mxu0 %v2295_v47 }
 0x27e   :  { %2298 = vmatpush1.bf16.msra.mxu0 %v2297_v53  ;;  %v1402_v53 = vld [vmem:[#allocation10 + $0x328] sm:$0xff] }
 0x27f   :  { %2300 = vmatprep.subr.bf16.mxu0 %v2299_v55  ;;  %v2421_v60 = vpack.c.bf16 %v1402_v53, %v1399_v52 }
 0x282   :  { %2302 = vmatpush1.bf16.msra.mxu0 %v2301_v42 }
 0x283   :  { %2304 = vmatprep.subr.bf16.mxu0 %v2303_v51  ;;  %v2325_v51 = vpack.c.bf16 %v1400_v50, %v1397_v46  ;;  %v1426_v46 = vld [vmem:[#allocation10 + $0x3e8] sm:$0xff]  ;;  %v1480_v50 = vld [vmem:[#allocation10 + $0x598] sm:$0xff] }
 0x286   :  { %2306 = vmatpush1.bf16.msra.mxu0 %v2305_v0  ;;  %v1405_v0 = vld [vmem:[#allocation10 + $0x340] sm:$0xff] }
 0x287   :  { %2308 = vmatprep.subr.bf16.mxu0 %v2307_v2  ;;  %v1408_v2 = vld [vmem:[#allocation10 + $0x358] sm:$0xff] }
 0x288   :  { %v2425_v11 = vpack.c.bf16 %v1408_v2, %v1405_v0  ;;  %v1433_v0 = vld [vmem:[#allocation10 + $0x420] sm:$0xff]  ;;  %v1436_v2 = vld [vmem:[#allocation10 + $0x438] sm:$0xff] }
 0x28a   :  { %2310 = vmatpush1.bf16.msra.mxu0 %v2309_v7  ;;  %v1459_v7 = vld [vmem:[#allocation10 + $0x4f0] sm:$0xff] }
 0x28b   :  { %2312 = vmatprep.subr.bf16.mxu0 %v2311_v8  ;;  %v1462_v8 = vld [vmem:[#allocation10 + $0x508] sm:$0xff] }
 0x28c   :  { %v2427_v14 = vpack.c.bf16 %v1462_v8, %v1459_v7  ;;  %v1440_v7 = vld [vmem:[#allocation10 + $0x458] sm:$0xff]  ;;  %v1443_v8 = vld [vmem:[#allocation10 + $0x470] sm:$0xff] }
 0x28e   :  { %2314 = vmatpush1.bf16.msra.mxu0 %v2313_v13  ;;  %v1412_v13 = vld [vmem:[#allocation10 + $0x378] sm:$0xff] }
 0x28f   :  { %2316 = vmatprep.subr.bf16.mxu0 %v2315_v1  ;;  %v2331_v1 = vpack.c.bf16 %v1413_v6, %v1410_v3  ;;  %v2333_v21 = vpack.c.bf16 %v1412_v13, %v1409_v12  ;;  %v1438_v6 = vld [vmem:[#allocation10 + $0x448] sm:$0xff]  ;;  %v1439_v13 = vld [vmem:[#allocation10 + $0x450] sm:$0xff] }
 0x292   :  { %2318 = vmatpush1.bf16.msra.mxu0 %v2317_v16  ;;  %v1414_v16 = vld [vmem:[#allocation10 + $0x388] sm:$0xff] }
 0x293   :  { %2320 = vmatprep.subr.bf16.mxu0 %v2319_v19  ;;  %v1468_v19 = vld [vmem:[#allocation10 + $0x538] sm:$0xff]  ;;  %v2429_v22 = vpack.c.bf16 %v1414_v16, %v1411_v15  ;;  %v1442_v16 = vld [vmem:[#allocation10 + $0x468] sm:$0xff] }
 0x294   :  { %v2431_v26 = vpack.c.bf16 %v1468_v19, %v1465_v18  ;;  %v1446_v18 = vld [vmem:[#allocation10 + $0x488] sm:$0xff]  ;;  %v1449_v19 = vld [vmem:[#allocation10 + $0x4a0] sm:$0xff] }
 0x295   :  { %v2355_v24 = vpack.c.bf16 %v1449_v19, %v1446_v18 }
 0x296   :  { %2322 = vmatpush1.bf16.msra.mxu0 %v2321_v25  ;;  %v2335_v25 = vpack.c.bf16 %v1419_v20, %v1416_v17  ;;  %v1441_v17 = vld [vmem:[#allocation10 + $0x460] sm:$0xff]  ;;  %v1444_v20 = vld [vmem:[#allocation10 + $0x478] sm:$0xff] }
 0x297   :  { %2324 = vmatprep.subr.bf16.mxu0 %v2323_v32  ;;  %v1474_v32 = vld [vmem:[#allocation10 + $0x568] sm:$0xff] }
 0x32c   :  { %v1150_v44 = vpop.f32.mrb[2].mxu0  ;;  %v2844_v45 = vpop.f32.mrb[4].mxu1 }
 0x32d   :  { %v2453_v47 = vadd.f32 %v1150_v44, %v996_v40  ;;  %v1152_v48 = vpop.f32.mrb[3].mxu0  ;;  %v1294_v49 = vpop.f32.mrb[5].mxu1  ;;  %v1424_v40 = vld [vmem:[#allocation10 + $0x3d8] sm:$0xff]  ;;  %v1423_v44 = vld [vmem:[#allocation10 + $0x3d0] sm:$0xff] }
 0x32e   :  { %v2454_v55 = vadd.f32 %v1152_v48, %v1000_v41  ;;  %v2456_v56 = vadd.f32 %v1294_v49, %v1008_v43  ;;  %v2339_v41 = vpack.c.bf16 %v1425_v30, %v1422_v29  ;;  %v2435_v43 = vpack.c.bf16 %v1474_v32, %v1471_v31  ;;  %v1431_v48 = vld [vmem:[#allocation10 + $0x410] sm:$0xff]  ;;  %v1477_v49 = vld [vmem:[#allocation10 + $0x580] sm:$0xff]  ;;  %v1454_v32 = vld [vmem:[#allocation10 + $0x4c8] sm:$0xff] }
 0x32f   :  { %v1297_v63 = vmax.f32 %v2453_v47, 0.0  ;;  %v1428_v47 = vld [vmem:[#allocation10 + $0x3f8] sm:$0xff]  ;;  %v2341_v52 = vpack.c.bf16 %v1424_v40, %v1421_v39  ;;  %v2437_v53 = vpack.c.bf16 %v1426_v46, %v1423_v44  ;;  %v2439_v57 = vpack.c.bf16 %v1480_v50, %v1477_v49  ;;  %v1451_v31 = vld [vmem:[#allocation10 + $0x4b0] sm:$0xff]  ;;  %v1457_v40 = vld [vmem:[#allocation10 + $0x4e0] sm:$0xff] }
 0x330   :  { %v1298_v42 = vmax.f32 %v2454_v55, 0.0  ;;  %v1300_v9 = vmax.f32 %v2456_v56, 0.0  ;;  %v1427_v55 = vld [vmem:[#allocation10 + $0x3f0] sm:$0xff]  ;;  %v2343_v56 = vpack.c.bf16 %v1431_v48, %v1428_v47  ;;  %v1466_v49 = vld [vmem:[#allocation10 + $0x528] sm:$0xff] }
 0x331   :  { %v2345_v62 = vpack.c.bf16 %v1430_v35, %v1427_v55  ;;  %v1467_v44 = vld [vmem:[#allocation10 + $0x530] sm:$0xff]  ;;  %v1470_v50 = vld [vmem:[#allocation10 + $0x548] sm:$0xff]  ;;  %v1469_v35 = vld [vmem:[#allocation10 + $0x540] sm:$0xff] }
 0x332   :  { %1574 = vmatprep.mubr.f32.mxu0 %v1298_v42  ;;  %1716 = vmatprep.mubr.f32.mxu1 %v1298_v42  ;;  %v1434_v42 = vld [vmem:[#allocation10 + $0x428] sm:$0xff]  ;;  %v1463_v48 = vld [vmem:[#allocation10 + $0x510] sm:$0xff] }
 0x333   :  { %1575 = vmatmul.mubr.f32.vlgmr.msra.gmra.mrb[4].mxu0 %v1297_v63  ;;  %1717 = vmatmul.mubr.f32.vlgmr.msra.gmra.mrb[6].mxu1 %v1297_v63  ;;  %v2441_v63 = vpack.c.bf16 %v1432_v59, %v1429_v58  ;;  %v1479_v58 = vld [vmem:[#allocation10 + $0x590] sm:$0xff] }
 0x334   :  { %2326 = vmatpush1.bf16.msra.mxu0 %v2325_v51  ;;  %2422 = vmatpush3.bf16.msra.mxu1 %v2421_v60  ;;  %v1437_v51 = vld [vmem:[#allocation10 + $0x440] sm:$0xff]  ;;  %v1483_v60 = vld [vmem:[#allocation10 + $0x5b0] sm:$0xff] }
 0x335   :  { %1645 = vmatprep.mubr.f32.mxu0 %v1300_v9  ;;  %1786 = vmatprep.mubr.f32.mxu1 %v1300_v9  ;;  %v2347_v3 = vpack.c.bf16 %v1437_v51, %v1434_v42  ;;  %v1489_v9 = vld [vmem:[#allocation10 + $0x5e0] sm:$0xff]  ;;  %v1475_v51 = vld [vmem:[#allocation10 + $0x570] sm:$0xff] }
 0x336   :  { %2328 = vmatprep.subr.bf16.mxu0 %v2327_v4  ;;  %2424 = vmatprep.subr.bf16.mxu1 %v2423_v5  ;;  %v2443_v4 = vpack.c.bf16 %v1486_v61, %v1483_v60  ;;  %v1435_v5 = vld [vmem:[#allocation10 + $0x430] sm:$0xff]  ;;  %v1478_v60 = vld [vmem:[#allocation10 + $0x588] sm:$0xff] }
 0x337   :  { %v2445_v12 = vpack.c.bf16 %v1438_v6, %v1435_v5  ;;  %v1482_v61 = vld [vmem:[#allocation10 + $0x5a8] sm:$0xff]  ;;  %v1491_v5 = vld [vmem:[#allocation10 + $0x5f0] sm:$0xff] }
 0x338   :  { %2330 = vmatpush1.bf16.msra.mxu0 %v2329_v10  ;;  %2426 = vmatpush3.bf16.msra.mxu1 %v2425_v11  ;;  %v1492_v10 = vld [vmem:[#allocation10 + $0x5f8] sm:$0xff]  ;;  %v2349_v11 = vpack.c.bf16 %v1436_v2, %v1433_v0  ;;  %v1481_v2 = vld [vmem:[#allocation10 + $0x5a0] sm:$0xff] }
 0x339   :  { %2332 = vmatprep.subr.bf16.mxu0 %v2331_v1  ;;  %2428 = vmatprep.subr.bf16.mxu1 %v2427_v14  ;;  %v1004_v1 = vrot.slane %v2836_v37, %v2829_v54  ;;  %v2351_v14 = vpack.c.bf16 %v1443_v8, %v1440_v7  ;;  %v2447_v15 = vpack.c.bf16 %v1492_v10, %v1489_v9  ;;  %v1445_v37 = vld [vmem:[#allocation10 + $0x480] sm:$0xff]  ;;  %v1487_v8 = vld [vmem:[#allocation10 + $0x5d0] sm:$0xff]  ;;  %v1490_v9 = vld [vmem:[#allocation10 + $0x5e8] sm:$0xff] }
 0x33a   :  { %v2385_v10 = vpack.c.bf16 %v1490_v9, %v1487_v8 }
 0x33b   :  { %v2849_v23 = vadd.f32 %v2844_v45, %v1004_v1  ;;  %v2361_v45 = vpack.c.bf16 %v1454_v32, %v1451_v31  ;;  %v1493_v1 = vld [vmem:[%s2876_s12] sm:$0x7] }
 0x33c   :  { %2334 = vmatpush1.bf16.msra.mxu0 %v2333_v21  ;;  %2430 = vmatpush3.bf16.msra.mxu1 %v2429_v22  ;;  %v2353_v21 = vpack.c.bf16 %v1442_v16, %v1439_v13  ;;  %v2449_v22 = vpack.c.bf16 %v1444_v20, %v1441_v17  ;;  %v1498_v19 = vrot.slane %v1493_v1, %v2803_v36 }
 0x33d   :  { %2336 = vmatprep.subr.bf16.mxu0 %v2335_v25  ;;  %2432 = vmatprep.subr.bf16.mxu1 %v2431_v26  ;;  %v1448_v25 = vld [vmem:[#allocation10 + $0x498] sm:$0xff]  ;;  %v1299_v29 = vmax.f32 %v2849_v23, 0.0 }
 0x33e   :  { %v1452_v26 = vld [vmem:[#allocation10 + $0x4b8] sm:$0xff]  ;;  %v2357_v28 = vpack.c.bf16 %v1448_v25, %v1445_v37  ;;  %v1502_v25 = vrot.slane %v1493_v1, %v2806_v38 }
 0x33f   :  { %v2359_v30 = vpack.c.bf16 %v1455_v27, %v1452_v26 }
 0x340   :  { %2338 = vmatpush1.bf16.msra.mxu0 %v2337_v33  ;;  %2434 = vmatpush3.bf16.msra.mxu1 %v2433_v34  ;;  %v1458_v33 = vld [vmem:[#allocation10 + $0x4e8] sm:$0xff]  ;;  %v1461_v34 = vld [vmem:[#allocation10 + $0x500] sm:$0xff] }
 0x341   :  { %2340 = vmatprep.subr.bf16.mxu0 %v2339_v41  ;;  %2436 = vmatprep.subr.bf16.mxu1 %v2435_v43  ;;  %v2363_v39 = vpack.c.bf16 %v1461_v34, %v1458_v33  ;;  %v1460_v41 = vld [vmem:[#allocation10 + $0x4f8] sm:$0xff] }
 0x342   :  { %v1464_v43 = vld [vmem:[#allocation10 + $0x518] sm:$0xff]  ;;  %v2365_v46 = vpack.c.bf16 %v1460_v41, %v1457_v40 }
 0x343   :  { %v2367_v47 = vpack.c.bf16 %v1467_v44, %v1464_v43  ;;  %v1844_v34 = vld [vmem:[%s2877_s13] ss:$0 sm:$0xff] }
 0x344   :  { %2342 = vmatpush1.bf16.msra.mxu0 %v2341_v52  ;;  %2438 = vmatpush3.bf16.msra.mxu1 %v2437_v53  ;;  %v1473_v52 = vld [vmem:[#allocation10 + $0x560] sm:$0xff]  ;;  %v2369_v53 = vpack.c.bf16 %v1466_v49, %v1463_v48  ;;  %v1845_v40 = vld [vmem:[#allocation2] ss:$0 sm:$0xff] }
 0x345   :  { %2344 = vmatprep.subr.bf16.mxu0 %v2343_v56  ;;  %2440 = vmatprep.subr.bf16.mxu1 %v2439_v57  ;;  %v2371_v55 = vpack.c.bf16 %v1473_v52, %v1470_v50  ;;  %v1472_v56 = vld [vmem:[#allocation10 + $0x558] sm:$0xff] }
 0x346   :  { %v1476_v57 = vld [vmem:[#allocation10 + $0x578] sm:$0xff]  ;;  %v2373_v59 = vpack.c.bf16 %v1472_v56, %v1469_v35 }
 0x347   :  { %v2375_v42 = vpack.c.bf16 %v1479_v58, %v1476_v57 }
 0x348   :  { %2346 = vmatpush1.bf16.msra.mxu0 %v2345_v62  ;;  %2442 = vmatpush3.bf16.msra.mxu1 %v2441_v63  ;;  %v1485_v62 = vld [vmem:[#allocation10 + $0x5c0] sm:$0xff]  ;;  %v2377_v63 = vpack.c.bf16 %v1478_v60, %v1475_v51 }
 0x349   :  { %2348 = vmatprep.subr.bf16.mxu0 %v2347_v3  ;;  %2444 = vmatprep.subr.bf16.mxu1 %v2443_v4  ;;  %v2379_v0 = vpack.c.bf16 %v1485_v62, %v1482_v61  ;;  %v1484_v3 = vld [vmem:[#allocation10 + $0x5b8] sm:$0xff] }
 0x34a   :  { %v1488_v4 = vld [vmem:[#allocation10 + $0x5d8] sm:$0xff]  ;;  %v2381_v6 = vpack.c.bf16 %v1484_v3, %v1481_v2 }
 0x34b   :  { %v2383_v7 = vpack.c.bf16 %v1491_v5, %v1488_v4 }
 0x34c   :  { %2350 = vmatpush1.bf16.msra.mxu0 %v2349_v11  ;;  %2446 = vmatpush3.bf16.msra.mxu1 %v2445_v12 }
 0x34d   :  { %2352 = vmatprep.subr.bf16.mxu0 %v2351_v14  ;;  %2448 = vmatprep.subr.bf16.mxu1 %v2447_v15  ;;  %v1506_v14 = vrot.slane %v1493_v1, %v2829_v54 }
 0x350   :  { %2354 = vmatpush1.bf16.msra.mxu0 %v2353_v21  ;;  %2450 = vmatpush3.bf16.msra.mxu1 %v2449_v22 }
 0x351   :  { %2356 = vmatprep.subr.bf16.mxu0 %v2355_v24 }
 0x353   :  { %1787 = vmatmul.mubr.f32.vlgmr.msra.gmra.mrb[8].mxu1 %v1299_v29 }
 0x354   :  { %2358 = vmatpush1.bf16.msra.mxu0 %v2357_v28 }
 0x355   :  { %2360 = vmatprep.subr.bf16.mxu0 %v2359_v30 }
 0x358   :  { %2362 = vmatpush1.bf16.msra.mxu0 %v2361_v45 }
 0x359   :  { %2364 = vmatprep.subr.bf16.mxu0 %v2363_v39 }
 0x35c   :  { %2366 = vmatpush1.bf16.msra.mxu0 %v2365_v46 }
 0x35d   :  { %2368 = vmatprep.subr.bf16.mxu0 %v2367_v47 }
 0x360   :  { %2370 = vmatpush1.bf16.msra.mxu0 %v2369_v53 }
 0x361   :  { %2372 = vmatprep.subr.bf16.mxu0 %v2371_v55 }
 0x364   :  { %2374 = vmatpush1.bf16.msra.mxu0 %v2373_v59 }
 0x365   :  { %2376 = vmatprep.subr.bf16.mxu0 %v2375_v42 }
 0x368   :  { %2378 = vmatpush1.bf16.msra.mxu0 %v2377_v63 }
 0x369   :  { %2380 = vmatprep.subr.bf16.mxu0 %v2379_v0 }
 0x36c   :  { %2382 = vmatpush1.bf16.msra.mxu0 %v2381_v6 }
 0x36d   :  { %2384 = vmatprep.subr.bf16.mxu0 %v2383_v7 }
 0x370   :  { %2386 = vmatpush1.bf16.msra.mxu0 %v2385_v10 }
 0x373   :  { %1646 = vmatmul.mubr.f32.vlgmr.msra.gmra.mrb[4].mxu0 %v1299_v29 }
 0x406   :  { %v1913_v11 = vpop.f32.mrb[6].mxu1 }
 0x407   :  { %v1914_v12 = vpop.f32.mrb[7].mxu1 }
 0x408   :  { %v1915_v13 = vadd.f32 %v1914_v12, %v1913_v11 }
 0x40a   :  { %v1719_v17 = vadd.f32 %v1915_v13, %v1506_v14 }
 0x426   :  { %v1948_v15 = vpop.f32.mrb[8].mxu1 }
 0x427   :  { %v1949_v16 = vpop.f32.mrb[9].mxu1 }
 0x428   :  { %v1950_v20 = vadd.f32 %v1949_v16, %v1948_v15 }
 0x42a   :  { %v1789_v18 = vadd.f32 %v1950_v20, %v1719_v17 }
 0x42c   :  { %v1843_v37 = vmul.f32 -1.442695, %v1789_v18 }
 0x446   :  { %v1647_v21 = vpop.f32.mrb[4].mxu0 }
 0x447   :  { %v2457_v22 = vadd.f32 %v1647_v21, %v1498_v19  ;;  %v1649_v23 = vpop.f32.mrb[5].mxu0 }
 0x448   :  { %v2458_v26 = vadd.f32 %v1649_v23, %v1502_v25 }
 0x449   :  { %v1842_v24 = vmul.f32 -1.442695, %v2457_v22 }
 0x44b   :  { %2485 = vpow2.f32 %v1842_v24 }
 0x44c   :  { %2487 = vpow2.f32 %v1843_v37 }
 0x44d   :  { %2489 = vtanh.f32 %v2458_v26 }
 0x455   :  { %v2486_v27 = vpop.eup %2485 }
 0x456   :  { %v1795_v28 = vadd.f32 1.0, %v2486_v27  ;;  %v2488_v54 = vpop.eup %2487 }
 0x457   :  { %v1802_v29 = vadd.f32 1.0, %v2488_v54  ;;  %v2490_v30 = vpop.eup %2489 }
 0x458   :  { %2491 = vrcp.f32 %v1795_v28 }
 0x459   :  { %2493 = vrcp.f32 %v1802_v29 }
 0x462   :  { %v2492_v31 = vpop.eup %2491 }
 0x463   :  { %v1805_v32 = vmul.f32 %v2492_v31, %v2490_v30  ;;  %v2494_v36 = vpop.eup %2493 }
 0x465   :  { %2495 = vtanh.f32 %v1805_v32 }
 0x46f   :  { %v2496_v33 = vpop.eup %2495 }
 0x470   :  { %v1807_v38 = vmul.f32 %v2496_v33, %v2494_v36 }
 0x472   :  { %v1815_v45 = vmul.f32 %v1844_v34, %v1807_v38 }
 0x474   :  { %v1817_v39 = vsel %vm1816_vm1, %v1815_v45, 0.0 }
 0x475   :  { %1818 = vadd.xlane.f32.xlu0 %v1817_v39 }
 0x502   :  { %v1819_v41 = vpop.xlane.xlu0 %1818 }
 0x503   :  { %v1827_v43 = vadd.f32 %v1845_v40, %v1819_v41 }
 0x505   :  { %1829 = vst.msk [vmem:[%s2879_s15] sm:$0x3] %vm1828_vm2, %v1827_v43 }
 0x506   :  { %1834 = vsyncpa [#allocation4], 1 }
 0x507   :  { %1835 = vsyncpa [#allocation6], 1 }
 0x508   :  { %1836 = vsyncpa [#allocation9], 1 }

</bundles_post_ra>
